<compile_context>
chip_gen: v7x
topology: tpu7x:2x2x1
jax: 0.10.0
libtpu: 0.0.40
codegen_flags: <defaults>
</compile_context>

<pallas_src>
import math
import functools

import jax
import jax.numpy as jnp
from jax.experimental import pallas as pl
from jax.experimental.pallas import tpu as pltpu

EPS = 1e-5  # torch nn.LayerNorm default


def _layer_norm(x, g, b):
    mean = jnp.mean(x, axis=-1, keepdims=True)
    xc = x - mean
    var = jnp.mean(xc * xc, axis=-1, keepdims=True)
    return xc * jax.lax.rsqrt(var + EPS) * g + b


# --------------------------------------------------------------------------
# Fused encoder-layer kernel: one grid step == one batch element's (S, E).
# --------------------------------------------------------------------------
def encoder_layer_kernel(x_ref, ln0g_ref, ln0b_ref,
                         wq_ref, bq_ref, wk_ref, bk_ref, wv_ref, bv_ref,
                         wo_ref, bo_ref, ln1g_ref, ln1b_ref,
                         w1_ref, b1_ref, w2_ref, b2_ref,
                         o_ref, *, num_heads):
    S, E = x_ref.shape
    hd = E // num_heads

    x = x_ref[...]                                              # (S, E) f32 residual

    # ---- pre-LN0 + fused Q/K/V projections (bf16 MXU, f32 accumulation) ----
    xn = _layer_norm(x, ln0g_ref[...], ln0b_ref[...]).astype(jnp.bfloat16)
    # 1/sqrt(head_dim) query scaling is folded into wq/bq at init time.
    q = (jnp.dot(xn, wq_ref[...], preferred_element_type=jnp.float32)
         + bq_ref[...]).astype(jnp.bfloat16)
    k = (jnp.dot(xn, wk_ref[...], preferred_element_type=jnp.float32)
         + bk_ref[...]).astype(jnp.bfloat16)
    v = (jnp.dot(xn, wv_ref[...], preferred_element_type=jnp.float32)
         + bv_ref[...]).astype(jnp.bfloat16)

    # ---- per-head softmax attention; contexts collected in registers ----
    ctx_heads = []
    for h in range(num_heads):                                  # few heads -> static unroll
        sl = slice(h * hd, (h + 1) * hd)
        qh, kh, vh = q[:, sl], k[:, sl], v[:, sl]               # (S, hd) bf16
        # q @ k^T without materializing a transpose (contract last dims).
        s = jax.lax.dot_general(qh, kh, (((1,), (1,)), ((), ())),
                                preferred_element_type=jnp.float32)   # (S, S)
        s = s - jnp.max(s, axis=-1, keepdims=True)
        p = jnp.exp(s)
        p = p * pl.reciprocal(jnp.sum(p, axis=-1, keepdims=True), approx=True)
        ctx_heads.append(jnp.dot(p.astype(jnp.bfloat16), vh,
                                 preferred_element_type=jnp.float32))
    ctx = jnp.concatenate(ctx_heads, axis=-1).astype(jnp.bfloat16)    # (S, E)

    attn = jnp.dot(ctx, wo_ref[...], preferred_element_type=jnp.float32) + bo_ref[...]
    x = x + attn                                                # residual (res_dropout = id)

    # ---- pre-LN1 + FFN (fc1 -> relu -> fc2) + residual ----
    yn = _layer_norm(x, ln1g_ref[...], ln1b_ref[...]).astype(jnp.bfloat16)
    h1 = jnp.dot(yn, w1_ref[...], preferred_element_type=jnp.float32) + b1_ref[...]
    h1 = jnp.maximum(h1, 0.0).astype(jnp.bfloat16)              # relu (relu_dropout = id)
    y = jnp.dot(h1, w2_ref[...], preferred_element_type=jnp.float32) + b2_ref[...]

    o_ref[...] = x + y                                          # final residual add


def _vmem_limit_bytes(S, E, num_heads):
    H = 4 * E
    weights = 2 * 2 * (4 * E * E + 2 * E * H)               # bf16 weights, x2 buffering worst case
    io = 2 * 2 * S * E * 4                                   # x/out f32 blocks, double-buffered
    inter = 4 * (S * H + num_heads * S * S + 6 * S * E)      # fc1 act, scores, misc temporaries
    return int(min(64 * 1024 * 1024,                         # <= v7x physical VMEM
                   max(32 * 1024 * 1024, weights + io + inter + (8 << 20))))


# --------------------------------------------------------------------------
# Public wrapper: (S, B, E) -> (S, B, E), same layout as the PyTorch module.
# --------------------------------------------------------------------------
def transformer_encoder_layer_forward(x_sbe, params, *, num_heads):
    S, B, E = x_sbe.shape
    H = 4 * E
    p = params

    # Free, layout-preserving view: batch b occupies lane columns [b*E,(b+1)*E)
    # -> no (S,B,E)<->(B,S,E) transpose / extra HBM round trips anywhere.
    x2d = x_sbe.astype(jnp.float32).reshape(S, B * E)

    blk = pl.BlockSpec((S, E), lambda b: (0, b))             # per-batch column block
    w_ee = pl.BlockSpec((E, E), lambda b: (0, 0))            # grid-invariant (resident) weights
    w_eh = pl.BlockSpec((E, H), lambda b: (0, 0))
    w_he = pl.BlockSpec((H, E), lambda b: (0, 0))
    vec_e = pl.BlockSpec((1, E), lambda b: (0, 0))
    vec_h = pl.BlockSpec((1, H), lambda b: (0, 0))

    out2d = pl.pallas_call(
        functools.partial(encoder_layer_kernel, num_heads=num_heads),
        out_shape=jax.ShapeDtypeStruct((S, B * E), jnp.float32),
        grid_spec=pltpu.PrefetchScalarGridSpec(
            num_scalar_prefetch=0,
            grid=(B,),
            in_specs=[blk,
                      vec_e, vec_e,                          # LN0 gamma/beta
                      w_ee, vec_e,                           # wq (scale folded), bq
                      w_ee, vec_e,                           # wk, bk
                      w_ee, vec_e,                           # wv, bv
                      w_ee, vec_e,                           # wo, bo
                      vec_e, vec_e,                          # LN1 gamma/beta
                      w_eh, vec_h,                           # w1, b1
                      w_he, vec_e],                          # w2, b2
            out_specs=blk),
        compiler_params=pltpu.CompilerParams(
            dimension_semantics=("parallel",),               # batch steps shard across TCs
            vmem_limit_bytes=_vmem_limit_bytes(S, E, num_heads)),
    )(x2d, p["ln0_g"], p["ln0_b"],
      p["wq"], p["bq"], p["wk"], p["bk"], p["wv"], p["bv"], p["wo"], p["bo"],
      p["ln1_g"], p["ln1_b"], p["w1"], p["b1"], p["w2"], p["b2"])

    return out2d.reshape(S, B, E)


# --------------------------------------------------------------------------
# Parameter init matching the PyTorch module (xavier_uniform weights, zero
# biases, LayerNorm gamma=1 / beta=0).  Weights pre-transposed to (in, out),
# stored in bf16; the 1/sqrt(head_dim) query scale is folded into wq/bq.
# --------------------------------------------------------------------------
def _xavier_uniform(key, fan_in, fan_out):
    bound = math.sqrt(6.0 / (fan_in + fan_out))
    return jax.random.uniform(key, (fan_in, fan_out), jnp.float32, -bound, bound)


def init_params(key, embed_dim, num_heads):
    E = embed_dim
    H = 4 * E
    scale = 1.0 / math.sqrt(E // num_heads)
    ks = jax.random.split(key, 6)
    bf = jnp.bfloat16
    return dict(
        wq=(_xavier_uniform(ks[0], E, E) * scale).astype(bf),
        bq=jnp.zeros((1, E), jnp.float32),                   # zero bias * scale == zero
        wk=_xavier_uniform(ks[1], E, E).astype(bf), bk=jnp.zeros((1, E), jnp.float32),
        wv=_xavier_uniform(ks[2], E, E).astype(bf), bv=jnp.zeros((1, E), jnp.float32),
        wo=_xavier_uniform(ks[3], E, E).astype(bf), bo=jnp.zeros((1, E), jnp.float32),
        w1=_xavier_uniform(ks[4], E, H).astype(bf), b1=jnp.zeros((1, H), jnp.float32),
        w2=_xavier_uniform(ks[5], H, E).astype(bf), b2=jnp.zeros((1, E), jnp.float32),
        ln0_g=jnp.ones((1, E), jnp.float32), ln0_b=jnp.zeros((1, E), jnp.float32),
        ln1_g=jnp.ones((1, E), jnp.float32), ln1_b=jnp.zeros((1, E), jnp.float32),
    )


if __name__ == "__main__":
    S, B, E, num_heads = 8, 2, 128, 4       # seq, batch, embed (lane-dense), heads

    key = jax.random.PRNGKey(0)
    k_param, k_in = jax.random.split(key)
    params = init_params(k_param, E, num_heads)
    x_in = jax.random.normal(k_in, (S, B, E), dtype=jnp.float32)

    out = transformer_encoder_layer_forward(x_in, params, num_heads=num_heads)
    out = jax.block_until_ready(out)

    assert out.shape == (S, B, E)
    assert bool(jnp.all(jnp.isfinite(out)))
    print("KERNEL_OK")
</pallas_src>

<mosaic_0001>
module attributes {stable_mosaic.version = 11 : i64} {
  func.func @encoder_layer_kernel(%arg0: i32, %arg1: memref<8x128xf32, #tpu.memory_space<vmem>>, %arg2: memref<1x128xf32, #tpu.memory_space<vmem>>, %arg3: memref<1x128xf32, #tpu.memory_space<vmem>>, %arg4: memref<128x128xbf16, #tpu.memory_space<vmem>>, %arg5: memref<1x128xf32, #tpu.memory_space<vmem>>, %arg6: memref<128x128xbf16, #tpu.memory_space<vmem>>, %arg7: memref<1x128xf32, #tpu.memory_space<vmem>>, %arg8: memref<128x128xbf16, #tpu.memory_space<vmem>>, %arg9: memref<1x128xf32, #tpu.memory_space<vmem>>, %arg10: memref<128x128xbf16, #tpu.memory_space<vmem>>, %arg11: memref<1x128xf32, #tpu.memory_space<vmem>>, %arg12: memref<1x128xf32, #tpu.memory_space<vmem>>, %arg13: memref<1x128xf32, #tpu.memory_space<vmem>>, %arg14: memref<128x512xbf16, #tpu.memory_space<vmem>>, %arg15: memref<1x512xf32, #tpu.memory_space<vmem>>, %arg16: memref<512x128xbf16, #tpu.memory_space<vmem>>, %arg17: memref<1x128xf32, #tpu.memory_space<vmem>>, %arg18: memref<8x128xf32, #tpu.memory_space<vmem>>) attributes {dimension_semantics = [#tpu.dimension_semantics<parallel>], iteration_bounds = array<i64: 2>, scalar_prefetch = 0 : i64, scratch_operands = 0 : i64, tpu.core_type = #tpu.core_type<tc>, window_params = [{transform_indices = @transform_0, window_bounds = array<i64: 8, 128>}, {pipeline_mode = #tpu.pipeline_mode<synchronous>, transform_indices = @transform_1, window_bounds = array<i64: 1, 128>}, {pipeline_mode = #tpu.pipeline_mode<synchronous>, transform_indices = @transform_2, window_bounds = array<i64: 1, 128>}, {pipeline_mode = #tpu.pipeline_mode<synchronous>, transform_indices = @transform_3, window_bounds = array<i64: 128, 128>}, {pipeline_mode = #tpu.pipeline_mode<synchronous>, transform_indices = @transform_4, window_bounds = array<i64: 1, 128>}, {pipeline_mode = #tpu.pipeline_mode<synchronous>, transform_indices = @transform_5, window_bounds = array<i64: 128, 128>}, {pipeline_mode = #tpu.pipeline_mode<synchronous>, transform_indices = @transform_6, window_bounds = array<i64: 1, 128>}, {pipeline_mode = #tpu.pipeline_mode<synchronous>, transform_indices = @transform_7, window_bounds = array<i64: 128, 128>}, {pipeline_mode = #tpu.pipeline_mode<synchronous>, transform_indices = @transform_8, window_bounds = array<i64: 1, 128>}, {pipeline_mode = #tpu.pipeline_mode<synchronous>, transform_indices = @transform_9, window_bounds = array<i64: 128, 128>}, {pipeline_mode = #tpu.pipeline_mode<synchronous>, transform_indices = @transform_10, window_bounds = array<i64: 1, 128>}, {pipeline_mode = #tpu.pipeline_mode<synchronous>, transform_indices = @transform_11, window_bounds = array<i64: 1, 128>}, {pipeline_mode = #tpu.pipeline_mode<synchronous>, transform_indices = @transform_12, window_bounds = array<i64: 1, 128>}, {pipeline_mode = #tpu.pipeline_mode<synchronous>, transform_indices = @transform_13, window_bounds = array<i64: 128, 512>}, {pipeline_mode = #tpu.pipeline_mode<synchronous>, transform_indices = @transform_14, window_bounds = array<i64: 1, 512>}, {pipeline_mode = #tpu.pipeline_mode<synchronous>, transform_indices = @transform_15, window_bounds = array<i64: 512, 128>}, {pipeline_mode = #tpu.pipeline_mode<synchronous>, transform_indices = @transform_16, window_bounds = array<i64: 1, 128>}, {transform_indices = @transform_17, window_bounds = array<i64: 8, 128>}]} {
    %c0 = arith.constant 0 : index
    %c0_0 = arith.constant 0 : index
    %0 = vector.load %arg1[%c0, %c0_0] : memref<8x128xf32, #tpu.memory_space<vmem>>, vector<8x128xf32>
    %c0_1 = arith.constant 0 : index
    %c0_2 = arith.constant 0 : index
    %1 = vector.load %arg2[%c0_1, %c0_2] : memref<1x128xf32, #tpu.memory_space<vmem>>, vector<1x128xf32>
    %c0_3 = arith.constant 0 : index
    %c0_4 = arith.constant 0 : index
    %2 = vector.load %arg3[%c0_3, %c0_4] : memref<1x128xf32, #tpu.memory_space<vmem>>, vector<1x128xf32>
    %cst = arith.constant dense<0.000000e+00> : vector<8xf32>
    %3 = vector.multi_reduction <add>, %0, %cst [1] : vector<8x128xf32> to vector<8xf32>
    %4 = vector.shape_cast %3 : vector<8xf32> to vector<8x1xf32>
    %cst_5 = arith.constant 1.280000e+02 : f32
    %5 = vector.broadcast %cst_5 : f32 to vector<8x1xf32>
    %6 = arith.divf %4, %5 : vector<8x1xf32>
    %7 = vector.broadcast %6 : vector<8x1xf32> to vector<8x128xf32>
    %8 = arith.subf %0, %7 : vector<8x128xf32>
    %9 = arith.mulf %8, %8 : vector<8x128xf32>
    %cst_6 = arith.constant dense<0.000000e+00> : vector<8xf32>
    %10 = vector.multi_reduction <add>, %9, %cst_6 [1] : vector<8x128xf32> to vector<8xf32>
    %11 = vector.shape_cast %10 : vector<8xf32> to vector<8x1xf32>
    %cst_7 = arith.constant 1.280000e+02 : f32
    %12 = vector.broadcast %cst_7 : f32 to vector<8x1xf32>
    %13 = arith.divf %11, %12 : vector<8x1xf32>
    %cst_8 = arith.constant 9.99999974E-6 : f32
    %14 = vector.broadcast %cst_8 : f32 to vector<8x1xf32>
    %15 = arith.addf %13, %14 : vector<8x1xf32>
    %16 = math.rsqrt %15 : vector<8x1xf32>
    %17 = vector.broadcast %16 : vector<8x1xf32> to vector<8x128xf32>
    %18 = arith.mulf %8, %17 : vector<8x128xf32>
    %19 = vector.broadcast %1 : vector<1x128xf32> to vector<8x128xf32>
    %20 = arith.mulf %18, %19 : vector<8x128xf32>
    %21 = vector.broadcast %2 : vector<1x128xf32> to vector<8x128xf32>
    %22 = arith.addf %20, %21 : vector<8x128xf32>
    %23 = arith.truncf %22 : vector<8x128xf32> to vector<8x128xbf16>
    %c0_9 = arith.constant 0 : index
    %c0_10 = arith.constant 0 : index
    %24 = vector.load %arg4[%c0_9, %c0_10] : memref<128x128xbf16, #tpu.memory_space<vmem>>, vector<128x128xbf16>
    %cst_11 = arith.constant dense<0.000000e+00> : vector<8x128xf32>
    %25 = tpu.matmul %23, %24, %cst_11 {dimension_numbers = #tpu.dot_dimension_numbers<[1], [0], [0], [1], [0, 0, 1, 1], [], []>} : vector<8x128xbf16>, vector<128x128xbf16>, vector<8x128xf32> -> vector<8x128xf32>
    %c0_12 = arith.constant 0 : index
    %c0_13 = arith.constant 0 : index
    %26 = vector.load %arg5[%c0_12, %c0_13] : memref<1x128xf32, #tpu.memory_space<vmem>>, vector<1x128xf32>
    %27 = vector.broadcast %26 : vector<1x128xf32> to vector<8x128xf32>
    %28 = arith.addf %25, %27 : vector<8x128xf32>
    %29 = arith.truncf %28 : vector<8x128xf32> to vector<8x128xbf16>
    %c0_14 = arith.constant 0 : index
    %c0_15 = arith.constant 0 : index
    %30 = vector.load %arg6[%c0_14, %c0_15] : memref<128x128xbf16, #tpu.memory_space<vmem>>, vector<128x128xbf16>
    %cst_16 = arith.constant dense<0.000000e+00> : vector<8x128xf32>
    %31 = tpu.matmul %23, %30, %cst_16 {dimension_numbers = #tpu.dot_dimension_numbers<[1], [0], [0], [1], [0, 0, 1, 1], [], []>} : vector<8x128xbf16>, vector<128x128xbf16>, vector<8x128xf32> -> vector<8x128xf32>
    %c0_17 = arith.constant 0 : index
    %c0_18 = arith.constant 0 : index
    %32 = vector.load %arg7[%c0_17, %c0_18] : memref<1x128xf32, #tpu.memory_space<vmem>>, vector<1x128xf32>
    %33 = vector.broadcast %32 : vector<1x128xf32> to vector<8x128xf32>
    %34 = arith.addf %31, %33 : vector<8x128xf32>
    %35 = arith.truncf %34 : vector<8x128xf32> to vector<8x128xbf16>
    %c0_19 = arith.constant 0 : index
    %c0_20 = arith.constant 0 : index
    %36 = vector.load %arg8[%c0_19, %c0_20] : memref<128x128xbf16, #tpu.memory_space<vmem>>, vector<128x128xbf16>
    %cst_21 = arith.constant dense<0.000000e+00> : vector<8x128xf32>
    %37 = tpu.matmul %23, %36, %cst_21 {dimension_numbers = #tpu.dot_dimension_numbers<[1], [0], [0], [1], [0, 0, 1, 1], [], []>} : vector<8x128xbf16>, vector<128x128xbf16>, vector<8x128xf32> -> vector<8x128xf32>
    %c0_22 = arith.constant 0 : index
    %c0_23 = arith.constant 0 : index
    %38 = vector.load %arg9[%c0_22, %c0_23] : memref<1x128xf32, #tpu.memory_space<vmem>>, vector<1x128xf32>
    %39 = vector.broadcast %38 : vector<1x128xf32> to vector<8x128xf32>
    %40 = arith.addf %37, %39 : vector<8x128xf32>
    %41 = arith.truncf %40 : vector<8x128xf32> to vector<8x128xbf16>
    %42 = vector.extract_strided_slice %29 {offsets = [0, 0], sizes = [8, 32], strides = [1, 1]} : vector<8x128xbf16> to vector<8x32xbf16>
    %43 = vector.extract_strided_slice %35 {offsets = [0, 0], sizes = [8, 32], strides = [1, 1]} : vector<8x128xbf16> to vector<8x32xbf16>
    %44 = vector.extract_strided_slice %41 {offsets = [0, 0], sizes = [8, 32], strides = [1, 1]} : vector<8x128xbf16> to vector<8x32xbf16>
    %cst_24 = arith.constant dense<0.000000e+00> : vector<8x8xf32>
    %45 = tpu.matmul %42, %43, %cst_24 {dimension_numbers = #tpu.dot_dimension_numbers<[1], [1], [0], [0], [0, 0, 1, 0], [], []>} : vector<8x32xbf16>, vector<8x32xbf16>, vector<8x8xf32> -> vector<8x8xf32>
    %cst_25 = arith.constant dense<0xFF800000> : vector<8xf32>
    %46 = vector.multi_reduction <maximumf>, %45, %cst_25 [1] : vector<8x8xf32> to vector<8xf32>
    %47 = vector.shape_cast %46 : vector<8xf32> to vector<8x1xf32>
    %48 = vector.broadcast %47 : vector<8x1xf32> to vector<8x8xf32>
    %49 = arith.subf %45, %48 : vector<8x8xf32>
    %50 = math.exp %49 : vector<8x8xf32>
    %cst_26 = arith.constant dense<0.000000e+00> : vector<8xf32>
    %51 = vector.multi_reduction <add>, %50, %cst_26 [1] : vector<8x8xf32> to vector<8xf32>
    %52 = vector.shape_cast %51 : vector<8xf32> to vector<8x1xf32>
    %53 = tpu.reciprocal %52 {approx = true} : vector<8x1xf32> -> vector<8x1xf32>
    %54 = vector.broadcast %53 : vector<8x1xf32> to vector<8x8xf32>
    %55 = arith.mulf %50, %54 : vector<8x8xf32>
    %56 = arith.truncf %55 : vector<8x8xf32> to vector<8x8xbf16>
    %cst_27 = arith.constant dense<0.000000e+00> : vector<8x32xf32>
    %57 = tpu.matmul %56, %44, %cst_27 {dimension_numbers = #tpu.dot_dimension_numbers<[1], [0], [0], [1], [0, 0, 1, 1], [], []>} : vector<8x8xbf16>, vector<8x32xbf16>, vector<8x32xf32> -> vector<8x32xf32>
    %58 = vector.extract_strided_slice %29 {offsets = [0, 32], sizes = [8, 32], strides = [1, 1]} : vector<8x128xbf16> to vector<8x32xbf16>
    %59 = vector.extract_strided_slice %35 {offsets = [0, 32], sizes = [8, 32], strides = [1, 1]} : vector<8x128xbf16> to vector<8x32xbf16>
    %60 = vector.extract_strided_slice %41 {offsets = [0, 32], sizes = [8, 32], strides = [1, 1]} : vector<8x128xbf16> to vector<8x32xbf16>
    %cst_28 = arith.constant dense<0.000000e+00> : vector<8x8xf32>
    %61 = tpu.matmul %58, %59, %cst_28 {dimension_numbers = #tpu.dot_dimension_numbers<[1], [1], [0], [0], [0, 0, 1, 0], [], []>} : vector<8x32xbf16>, vector<8x32xbf16>, vector<8x8xf32> -> vector<8x8xf32>
    %cst_29 = arith.constant dense<0xFF800000> : vector<8xf32>
    %62 = vector.multi_reduction <maximumf>, %61, %cst_29 [1] : vector<8x8xf32> to vector<8xf32>
    %63 = vector.shape_cast %62 : vector<8xf32> to vector<8x1xf32>
    %64 = vector.broadcast %63 : vector<8x1xf32> to vector<8x8xf32>
    %65 = arith.subf %61, %64 : vector<8x8xf32>
    %66 = math.exp %65 : vector<8x8xf32>
    %cst_30 = arith.constant dense<0.000000e+00> : vector<8xf32>
    %67 = vector.multi_reduction <add>, %66, %cst_30 [1] : vector<8x8xf32> to vector<8xf32>
    %68 = vector.shape_cast %67 : vector<8xf32> to vector<8x1xf32>
    %69 = tpu.reciprocal %68 {approx = true} : vector<8x1xf32> -> vector<8x1xf32>
    %70 = vector.broadcast %69 : vector<8x1xf32> to vector<8x8xf32>
    %71 = arith.mulf %66, %70 : vector<8x8xf32>
    %72 = arith.truncf %71 : vector<8x8xf32> to vector<8x8xbf16>
    %cst_31 = arith.constant dense<0.000000e+00> : vector<8x32xf32>
    %73 = tpu.matmul %72, %60, %cst_31 {dimension_numbers = #tpu.dot_dimension_numbers<[1], [0], [0], [1], [0, 0, 1, 1], [], []>} : vector<8x8xbf16>, vector<8x32xbf16>, vector<8x32xf32> -> vector<8x32xf32>
    %74 = vector.extract_strided_slice %29 {offsets = [0, 64], sizes = [8, 32], strides = [1, 1]} : vector<8x128xbf16> to vector<8x32xbf16>
    %75 = vector.extract_strided_slice %35 {offsets = [0, 64], sizes = [8, 32], strides = [1, 1]} : vector<8x128xbf16> to vector<8x32xbf16>
    %76 = vector.extract_strided_slice %41 {offsets = [0, 64], sizes = [8, 32], strides = [1, 1]} : vector<8x128xbf16> to vector<8x32xbf16>
    %cst_32 = arith.constant dense<0.000000e+00> : vector<8x8xf32>
    %77 = tpu.matmul %74, %75, %cst_32 {dimension_numbers = #tpu.dot_dimension_numbers<[1], [1], [0], [0], [0, 0, 1, 0], [], []>} : vector<8x32xbf16>, vector<8x32xbf16>, vector<8x8xf32> -> vector<8x8xf32>
    %cst_33 = arith.constant dense<0xFF800000> : vector<8xf32>
    %78 = vector.multi_reduction <maximumf>, %77, %cst_33 [1] : vector<8x8xf32> to vector<8xf32>
    %79 = vector.shape_cast %78 : vector<8xf32> to vector<8x1xf32>
    %80 = vector.broadcast %79 : vector<8x1xf32> to vector<8x8xf32>
    %81 = arith.subf %77, %80 : vector<8x8xf32>
    %82 = math.exp %81 : vector<8x8xf32>
    %cst_34 = arith.constant dense<0.000000e+00> : vector<8xf32>
    %83 = vector.multi_reduction <add>, %82, %cst_34 [1] : vector<8x8xf32> to vector<8xf32>
    %84 = vector.shape_cast %83 : vector<8xf32> to vector<8x1xf32>
    %85 = tpu.reciprocal %84 {approx = true} : vector<8x1xf32> -> vector<8x1xf32>
    %86 = vector.broadcast %85 : vector<8x1xf32> to vector<8x8xf32>
    %87 = arith.mulf %82, %86 : vector<8x8xf32>
    %88 = arith.truncf %87 : vector<8x8xf32> to vector<8x8xbf16>
    %cst_35 = arith.constant dense<0.000000e+00> : vector<8x32xf32>
    %89 = tpu.matmul %88, %76, %cst_35 {dimension_numbers = #tpu.dot_dimension_numbers<[1], [0], [0], [1], [0, 0, 1, 1], [], []>} : vector<8x8xbf16>, vector<8x32xbf16>, vector<8x32xf32> -> vector<8x32xf32>
    %90 = vector.extract_strided_slice %29 {offsets = [0, 96], sizes = [8, 32], strides = [1, 1]} : vector<8x128xbf16> to vector<8x32xbf16>
    %91 = vector.extract_strided_slice %35 {offsets = [0, 96], sizes = [8, 32], strides = [1, 1]} : vector<8x128xbf16> to vector<8x32xbf16>
    %92 = vector.extract_strided_slice %41 {offsets = [0, 96], sizes = [8, 32], strides = [1, 1]} : vector<8x128xbf16> to vector<8x32xbf16>
    %cst_36 = arith.constant dense<0.000000e+00> : vector<8x8xf32>
    %93 = tpu.matmul %90, %91, %cst_36 {dimension_numbers = #tpu.dot_dimension_numbers<[1], [1], [0], [0], [0, 0, 1, 0], [], []>} : vector<8x32xbf16>, vector<8x32xbf16>, vector<8x8xf32> -> vector<8x8xf32>
    %cst_37 = arith.constant dense<0xFF800000> : vector<8xf32>
    %94 = vector.multi_reduction <maximumf>, %93, %cst_37 [1] : vector<8x8xf32> to vector<8xf32>
    %95 = vector.shape_cast %94 : vector<8xf32> to vector<8x1xf32>
    %96 = vector.broadcast %95 : vector<8x1xf32> to vector<8x8xf32>
    %97 = arith.subf %93, %96 : vector<8x8xf32>
    %98 = math.exp %97 : vector<8x8xf32>
    %cst_38 = arith.constant dense<0.000000e+00> : vector<8xf32>
    %99 = vector.multi_reduction <add>, %98, %cst_38 [1] : vector<8x8xf32> to vector<8xf32>
    %100 = vector.shape_cast %99 : vector<8xf32> to vector<8x1xf32>
    %101 = tpu.reciprocal %100 {approx = true} : vector<8x1xf32> -> vector<8x1xf32>
    %102 = vector.broadcast %101 : vector<8x1xf32> to vector<8x8xf32>
    %103 = arith.mulf %98, %102 : vector<8x8xf32>
    %104 = arith.truncf %103 : vector<8x8xf32> to vector<8x8xbf16>
    %cst_39 = arith.constant dense<0.000000e+00> : vector<8x32xf32>
    %105 = tpu.matmul %104, %92, %cst_39 {dimension_numbers = #tpu.dot_dimension_numbers<[1], [0], [0], [1], [0, 0, 1, 1], [], []>} : vector<8x8xbf16>, vector<8x32xbf16>, vector<8x32xf32> -> vector<8x32xf32>
    %106 = tpu.concatenate %57, %73, %89, %105 in 1 : vector<8x32xf32>, vector<8x32xf32>, vector<8x32xf32>, vector<8x32xf32> -> vector<8x128xf32>
    %107 = arith.truncf %106 : vector<8x128xf32> to vector<8x128xbf16>
    %c0_40 = arith.constant 0 : index
    %c0_41 = arith.constant 0 : index
    %108 = vector.load %arg10[%c0_40, %c0_41] : memref<128x128xbf16, #tpu.memory_space<vmem>>, vector<128x128xbf16>
    %cst_42 = arith.constant dense<0.000000e+00> : vector<8x128xf32>
    %109 = tpu.matmul %107, %108, %cst_42 {dimension_numbers = #tpu.dot_dimension_numbers<[1], [0], [0], [1], [0, 0, 1, 1], [], []>} : vector<8x128xbf16>, vector<128x128xbf16>, vector<8x128xf32> -> vector<8x128xf32>
    %c0_43 = arith.constant 0 : index
    %c0_44 = arith.constant 0 : index
    %110 = vector.load %arg11[%c0_43, %c0_44] : memref<1x128xf32, #tpu.memory_space<vmem>>, vector<1x128xf32>
    %111 = vector.broadcast %110 : vector<1x128xf32> to vector<8x128xf32>
    %112 = arith.addf %109, %111 : vector<8x128xf32>
    %113 = arith.addf %0, %112 : vector<8x128xf32>
    %c0_45 = arith.constant 0 : index
    %c0_46 = arith.constant 0 : index
    %114 = vector.load %arg12[%c0_45, %c0_46] : memref<1x128xf32, #tpu.memory_space<vmem>>, vector<1x128xf32>
    %c0_47 = arith.constant 0 : index
    %c0_48 = arith.constant 0 : index
    %115 = vector.load %arg13[%c0_47, %c0_48] : memref<1x128xf32, #tpu.memory_space<vmem>>, vector<1x128xf32>
    %cst_49 = arith.constant dense<0.000000e+00> : vector<8xf32>
    %116 = vector.multi_reduction <add>, %113, %cst_49 [1] : vector<8x128xf32> to vector<8xf32>
    %117 = vector.shape_cast %116 : vector<8xf32> to vector<8x1xf32>
    %cst_50 = arith.constant 1.280000e+02 : f32
    %118 = vector.broadcast %cst_50 : f32 to vector<8x1xf32>
    %119 = arith.divf %117, %118 : vector<8x1xf32>
    %120 = vector.broadcast %119 : vector<8x1xf32> to vector<8x128xf32>
    %121 = arith.subf %113, %120 : vector<8x128xf32>
    %122 = arith.mulf %121, %121 : vector<8x128xf32>
    %cst_51 = arith.constant dense<0.000000e+00> : vector<8xf32>
    %123 = vector.multi_reduction <add>, %122, %cst_51 [1] : vector<8x128xf32> to vector<8xf32>
    %124 = vector.shape_cast %123 : vector<8xf32> to vector<8x1xf32>
    %cst_52 = arith.constant 1.280000e+02 : f32
    %125 = vector.broadcast %cst_52 : f32 to vector<8x1xf32>
    %126 = arith.divf %124, %125 : vector<8x1xf32>
    %cst_53 = arith.constant 9.99999974E-6 : f32
    %127 = vector.broadcast %cst_53 : f32 to vector<8x1xf32>
    %128 = arith.addf %126, %127 : vector<8x1xf32>
    %129 = math.rsqrt %128 : vector<8x1xf32>
    %130 = vector.broadcast %129 : vector<8x1xf32> to vector<8x128xf32>
    %131 = arith.mulf %121, %130 : vector<8x128xf32>
    %132 = vector.broadcast %114 : vector<1x128xf32> to vector<8x128xf32>
    %133 = arith.mulf %131, %132 : vector<8x128xf32>
    %134 = vector.broadcast %115 : vector<1x128xf32> to vector<8x128xf32>
    %135 = arith.addf %133, %134 : vector<8x128xf32>
    %136 = arith.truncf %135 : vector<8x128xf32> to vector<8x128xbf16>
    %c0_54 = arith.constant 0 : index
    %c0_55 = arith.constant 0 : index
    %137 = vector.load %arg14[%c0_54, %c0_55] : memref<128x512xbf16, #tpu.memory_space<vmem>>, vector<128x512xbf16>
    %cst_56 = arith.constant dense<0.000000e+00> : vector<8x512xf32>
    %138 = tpu.matmul %136, %137, %cst_56 {dimension_numbers = #tpu.dot_dimension_numbers<[1], [0], [0], [1], [0, 0, 1, 1], [], []>} : vector<8x128xbf16>, vector<128x512xbf16>, vector<8x512xf32> -> vector<8x512xf32>
    %c0_57 = arith.constant 0 : index
    %c0_58 = arith.constant 0 : index
    %139 = vector.load %arg15[%c0_57, %c0_58] : memref<1x512xf32, #tpu.memory_space<vmem>>, vector<1x512xf32>
    %140 = vector.broadcast %139 : vector<1x512xf32> to vector<8x512xf32>
    %141 = arith.addf %138, %140 : vector<8x512xf32>
    %cst_59 = arith.constant 0.000000e+00 : f32
    %142 = vector.broadcast %cst_59 : f32 to vector<8x512xf32>
    %143 = arith.maximumf %141, %142 : vector<8x512xf32>
    %144 = arith.truncf %143 : vector<8x512xf32> to vector<8x512xbf16>
    %c0_60 = arith.constant 0 : index
    %c0_61 = arith.constant 0 : index
    %145 = vector.load %arg16[%c0_60, %c0_61] : memref<512x128xbf16, #tpu.memory_space<vmem>>, vector<512x128xbf16>
    %cst_62 = arith.constant dense<0.000000e+00> : vector<8x128xf32>
    %146 = tpu.matmul %144, %145, %cst_62 {dimension_numbers = #tpu.dot_dimension_numbers<[1], [0], [0], [1], [0, 0, 1, 1], [], []>} : vector<8x512xbf16>, vector<512x128xbf16>, vector<8x128xf32> -> vector<8x128xf32>
    %c0_63 = arith.constant 0 : index
    %c0_64 = arith.constant 0 : index
    %147 = vector.load %arg17[%c0_63, %c0_64] : memref<1x128xf32, #tpu.memory_space<vmem>>, vector<1x128xf32>
    %148 = vector.broadcast %147 : vector<1x128xf32> to vector<8x128xf32>
    %149 = arith.addf %146, %148 : vector<8x128xf32>
    %150 = arith.addf %113, %149 : vector<8x128xf32>
    %c0_65 = arith.constant 0 : index
    %c0_66 = arith.constant 0 : index
    %151 = vector.load %arg18[%c0_65, %c0_66] : memref<8x128xf32, #tpu.memory_space<vmem>>, vector<8x128xf32>
    tpu.vector_store %arg18[%c0_65, %c0_66], %150 {strides = array<i32>} : memref<8x128xf32, #tpu.memory_space<vmem>>, vector<8x128xf32>,
    return
  }
  func.func @transform_0(%arg0: i32) -> (i32, i32) {
    %c0_i32 = arith.constant 0 : i32
    %c0_i32_0 = arith.constant 0 : i32
    return %c0_i32, %arg0 : i32, i32
  }
  func.func @transform_1(%arg0: i32) -> (i32, i32) {
    %c0_i32 = arith.constant 0 : i32
    %c0_i32_0 = arith.constant 0 : i32
    %c0_i32_1 = arith.constant 0 : i32
    return %c0_i32, %c0_i32_0 : i32, i32
  }
  func.func @transform_2(%arg0: i32) -> (i32, i32) {
    %c0_i32 = arith.constant 0 : i32
    %c0_i32_0 = arith.constant 0 : i32
    %c0_i32_1 = arith.constant 0 : i32
    return %c0_i32, %c0_i32_0 : i32, i32
  }
  func.func @transform_3(%arg0: i32) -> (i32, i32) {
    %c0_i32 = arith.constant 0 : i32
    %c0_i32_0 = arith.constant 0 : i32
    %c0_i32_1 = arith.constant 0 : i32
    return %c0_i32, %c0_i32_0 : i32, i32
  }
  func.func @transform_4(%arg0: i32) -> (i32, i32) {
    %c0_i32 = arith.constant 0 : i32
    %c0_i32_0 = arith.constant 0 : i32
    %c0_i32_1 = arith.constant 0 : i32
    return %c0_i32, %c0_i32_0 : i32, i32
  }
  func.func @transform_5(%arg0: i32) -> (i32, i32) {
    %c0_i32 = arith.constant 0 : i32
    %c0_i32_0 = arith.constant 0 : i32
    %c0_i32_1 = arith.constant 0 : i32
    return %c0_i32, %c0_i32_0 : i32, i32
  }
  func.func @transform_6(%arg0: i32) -> (i32, i32) {
    %c0_i32 = arith.constant 0 : i32
    %c0_i32_0 = arith.constant 0 : i32
    %c0_i32_1 = arith.constant 0 : i32
    return %c0_i32, %c0_i32_0 : i32, i32
  }
  func.func @transform_7(%arg0: i32) -> (i32, i32) {
    %c0_i32 = arith.constant 0 : i32
    %c0_i32_0 = arith.constant 0 : i32
    %c0_i32_1 = arith.constant 0 : i32
    return %c0_i32, %c0_i32_0 : i32, i32
  }
  func.func @transform_8(%arg0: i32) -> (i32, i32) {
    %c0_i32 = arith.constant 0 : i32
    %c0_i32_0 = arith.constant 0 : i32
    %c0_i32_1 = arith.constant 0 : i32
    return %c0_i32, %c0_i32_0 : i32, i32
  }
  func.func @transform_9(%arg0: i32) -> (i32, i32) {
    %c0_i32 = arith.constant 0 : i32
    %c0_i32_0 = arith.constant 0 : i32
    %c0_i32_1 = arith.constant 0 : i32
    return %c0_i32, %c0_i32_0 : i32, i32
  }
  func.func @transform_10(%arg0: i32) -> (i32, i32) {
    %c0_i32 = arith.constant 0 : i32
    %c0_i32_0 = arith.constant 0 : i32
    %c0_i32_1 = arith.constant 0 : i32
    return %c0_i32, %c0_i32_0 : i32, i32
  }
  func.func @transform_11(%arg0: i32) -> (i32, i32) {
    %c0_i32 = arith.constant 0 : i32
    %c0_i32_0 = arith.constant 0 : i32
    %c0_i32_1 = arith.constant 0 : i32
    return %c0_i32, %c0_i32_0 : i32, i32
  }
  func.func @transform_12(%arg0: i32) -> (i32, i32) {
    %c0_i32 = arith.constant 0 : i32
    %c0_i32_0 = arith.constant 0 : i32
    %c0_i32_1 = arith.constant 0 : i32
    return %c0_i32, %c0_i32_0 : i32, i32
  }
  func.func @transform_13(%arg0: i32) -> (i32, i32) {
    %c0_i32 = arith.constant 0 : i32
    %c0_i32_0 = arith.constant 0 : i32
    %c0_i32_1 = arith.constant 0 : i32
    return %c0_i32, %c0_i32_0 : i32, i32
  }
  func.func @transform_14(%arg0: i32) -> (i32, i32) {
    %c0_i32 = arith.constant 0 : i32
    %c0_i32_0 = arith.constant 0 : i32
    %c0_i32_1 = arith.constant 0 : i32
    return %c0_i32, %c0_i32_0 : i32, i32
  }
  func.func @transform_15(%arg0: i32) -> (i32, i32) {
    %c0_i32 = arith.constant 0 : i32
    %c0_i32_0 = arith.constant 0 : i32
    %c0_i32_1 = arith.constant 0 : i32
    return %c0_i32, %c0_i32_0 : i32, i32
  }
  func.func @transform_16(%arg0: i32) -> (i32, i32) {
    %c0_i32 = arith.constant 0 : i32
    %c0_i32_0 = arith.constant 0 : i32
    %c0_i32_1 = arith.constant 0 : i32
    return %c0_i32, %c0_i32_0 : i32, i32
  }
  func.func @transform_17(%arg0: i32) -> (i32, i32) {
    %c0_i32 = arith.constant 0 : i32
    %c0_i32_0 = arith.constant 0 : i32
    return %c0_i32, %arg0 : i32, i32
  }
}

</mosaic_0001>

<bundles_post_ra>
// kernel: tpu_custom_call.1
= control target key start
LH: loop header
LB: loop body
LE: loop exit
PB: predicated region body
PF: predicated region fallthrough
CT: control target
= control target key end

     0   :  { %s3903_s0 = inlined_call_operand.hbm [shape: f32[8,256], index: 0, kind: input, shape index: {}]   ;;  %s3904_s1 = inlined_call_operand.vmem [shape: f32[1,128], index: 1, kind: input, shape index: {}]   ;;  %s3905_s2 = inlined_call_operand.vmem [shape: f32[1,128], index: 2, kind: input, shape index: {}]   ;;  %s3906_s3 = inlined_call_operand.hbm [shape: bf16[128,128], index: 3, kind: input, shape index: {}]   ;;  %s3907_s4 = inlined_call_operand.vmem [shape: f32[1,128], index: 4, kind: input, shape index: {}]   ;;  %s3908_s5 = inlined_call_operand.hbm [shape: bf16[128,128], index: 5, kind: input, shape index: {}]   ;;  %s3909_s6 = inlined_call_operand.vmem [shape: f32[1,128], index: 6, kind: input, shape index: {}]   ;;  %s3910_s7 = inlined_call_operand.hbm [shape: bf16[128,128], index: 7, kind: input, shape index: {}]   ;;  %s3911_s8 = inlined_call_operand.vmem [shape: f32[1,128], index: 8, kind: input, shape index: {}]   ;;  %s3912_s9 = inlined_call_operand.hbm [shape: bf16[128,128], index: 9, kind: input, shape index: {}]   ;;  %s3913_s10 = inlined_call_operand.vmem [shape: f32[1,128], index: 10, kind: input, shape index: {}]   ;;  %s3914_s11 = inlined_call_operand.vmem [shape: f32[1,128], index: 11, kind: input, shape index: {}]   ;;  %s3915_s12 = inlined_call_operand.vmem [shape: f32[1,128], index: 12, kind: input, shape index: {}]   ;;  %s3916_s13 = inlined_call_operand.hbm [shape: bf16[128,512], index: 13, kind: input, shape index: {}]   ;;  %s3917_s14 = inlined_call_operand.vmem [shape: f32[1,512], index: 14, kind: input, shape index: {}]   ;;  %s3918_s15 = inlined_call_operand.hbm [shape: bf16[512,128], index: 15, kind: input, shape index: {}]   ;;  %s3919_s16 = inlined_call_operand.vmem [shape: f32[1,128], index: 16, kind: input, shape index: {}]   ;;  %s3920_s17 = inlined_call_operand.hbm [shape: f32[8,256], index: 17, kind: output, shape index: {}]  }
   0x1   :  { %3930 = sst [smem:[#allocation20_spill]] %s3903_s0 }
   0x2   :  { %3931 = sst [smem:[#allocation21_spill]] %s3904_s1 }
   0x3   :  { %3932 = sst [smem:[#allocation22_spill]] %s3906_s3 }
   0x4   :  { %3933 = sst [smem:[#allocation23_spill]] %s3910_s7 }
   0x5   :  { %3934 = sst [smem:[#allocation24_spill]] %s3911_s8 }
   0x6   :  { %3935 = sst [smem:[#allocation25_spill]] %s3913_s10 }
   0x7   :  { %3936 = sst [smem:[#allocation26_spill]] %s3914_s11 }
   0x8   :  { %3937 = sst [smem:[#allocation27_spill]] %s3915_s12 }
   0x9   :  { %3938 = sst [smem:[#allocation28_spill]] %s3917_s14 }
   0xa   :  { %3939 = sst [smem:[#allocation29_spill]] %s3919_s16 }
   0xb   :  { %3940 = sst [smem:[#allocation30_spill]] %s3920_s17 }
   0xc   :  { %22 = vsyncpa [#allocation3], 0 }
   0xd   :  { %24 = vsyncpa [#allocation3 + $0x1], 0 }
   0xe   :  { %25 = vsyncpa [#allocation6], 0 }
   0xf   :  { %26 = vsyncpa [#allocation9], 0 }
  0x10   :  { %27 = vsyncpa [#allocation12], 0 }
  0x11   :  { %28 = vsyncpa [#allocation4], 0 }
  0x12   :  { %30 = vsyncpa [#allocation4 + $0x1], 0  ;;  %s3402_s24 = smov 0   ;;  %s3404_s25 = smov 0  }
  0x13   :  { %s3406_s26 = smov 0   ;;  %s3408_s27 = smov 0  }
  0x14 LB: > { %s3294_s28 = smov [#allocation5]   ;;  %s3423_s0 = sadd.s32 4294967295, %s3292_s27   ;;  %s3292_s27 = sphi %s3408_s27, %s3976_s27   ;;  %s3288_s26 = sphi %s3406_s26, %s3975_s26   ;;  %s3284_s25 = sphi %s3404_s25, %s3974_s25   ;;  %s3280_s24 = sphi %s3402_s24, %s3973_s24  }
  0x15   : > { %s447_s29 = sshll.u32 %s3294_s28, 4  ;;  %p2407_p0 = scmp.ge.s32.totalorder %s3292_s27, 1  ;;  %s3428_s29 = int_to_ptr.vmem [resolvable:$true] %s447_s29 }
  0x16   : > { %p3927_p1 = scmp.eq.s32.totalorder %s3423_s0, 0  ;;  %p429_p2 = scmp.lt.s32.totalorder %s3292_s27, 3 }
  0x17   : > { %s3295_s18 = smov [#allocation8]   ;;  %s3296_s20 = smov [#allocation11]  }
  0x18   : > { %p3430_p3 = pnand %p2407_p0, %p429_p2  ;;  %s479_s19 = sshll.u32 %s3295_s18, 4  ;;  %s3443_s19 = int_to_ptr.vmem [resolvable:$true] %s479_s19 }
  0x19   : > { %s517_s21 = sshll.u32 %s3296_s20, 4  ;;  %s3943_s3 = sld [smem:[#allocation22_spill]]  ;;  %s3445_s21 = int_to_ptr.vmem [resolvable:$true] %s517_s21 }
  0x1a   : > { %s3941_s30 = scalar_select %p3430_p3, 1, 0 }
  0x1b   : > { %p2795_p5 = pneg %p3430_p3 }
  0x1d   : > { %p3439_p6 = pnand %p2795_p5, %p3927_p1 }
  0x1f   : > { %s3016_s28 = scalar_lea.hbm %s3943_s3, 1024  ;;  %p3455_p8 = pneg %p3439_p6 }
  0x20   : > { %p3017_p7 = scmp.ne.s32.totalorder %s3943_s3, %s3016_s28  ;;  %p3023_p11 = scmp.lt.u32.totalorder %s3016_s28, %s3943_s3 }
  0x22   : > { %p3019_p9 = pnand %p3455_p8, %p3017_p7 }
  0x24   : > { %p3020_p10 = pneg %p3019_p9 }
  0x26   : > { %p3025_p12 = pnand %p3023_p11, %p3020_p10 }
  0x28   : > { %3028 = shalt.err (!%p3025_p12)
}
  0x29   : > { %s3029_s16 = scalar_lea.vmem %s3428_s29, 1024  ;;  %p3037_p5 = scmp.lt.s32.totalorder %s3428_s29, %s3428_s29 }
  0x2a   : > { %p3030_p13 = scmp.ne.s32.totalorder %s3428_s29, %s3029_s16  ;;  %p3038_p4 = scmp.lt.s32.totalorder %s3029_s16, %s3029_s16 }
  0x2c   : > { %p3032_p0 = pnand %p3030_p13, %p3455_p8  ;;  %p3039_p7 = por %p3038_p4, %p3037_p5 }
  0x2e   : > { %p3033_p2 = pneg %p3032_p0 }
  0x30   : > { %p3040_p9 = pnand %p3039_p7, %p3033_p2 }
  0x32   : > { %3043 = shalt.err (!%p3040_p9)
}
  0x33   : > { %s3923_s17 = smov 64   ;;  %s3925_s14 = smov 4  }
  0x34   : > { %2798 = dma.hbm_to_vmem [thread:$0]  (!%p3439_p6), %s3943_s3, 1024, %s3428_s29, [#allocation6], %s3923_s17, %s3923_s17, %s3925_s14  }
  0x35   : > { %s3945_s7 = sld [smem:[#allocation23_spill]] }
  0x3b   : > { %s3044_s16 = scalar_lea.hbm %s3945_s7, 1024 }
  0x3c   : > { %p3045_p4 = scmp.ne.s32.totalorder %s3945_s7, %s3044_s16  ;;  %p3051_p12 = scmp.lt.u32.totalorder %s3044_s16, %s3945_s7 }
  0x3e   : > { %p3047_p10 = pnand %p3045_p4, %p3455_p8 }
  0x40   : > { %p3048_p11 = pneg %p3047_p10 }
  0x42   : > { %p3053_p13 = pnand %p3051_p12, %p3048_p11 }
  0x44   : > { %3056 = shalt.err (!%p3053_p13)
}
  0x45   : > { %s3057_s29 = scalar_lea.vmem %s3443_s19, 1024  ;;  %p3065_p7 = scmp.lt.s32.totalorder %s3443_s19, %s3443_s19 }
  0x46   : > { %p3058_p0 = scmp.ne.s32.totalorder %s3443_s19, %s3057_s29  ;;  %p3066_p9 = scmp.lt.s32.totalorder %s3057_s29, %s3057_s29 }
  0x48   : > { %p3060_p2 = pnand %p3058_p0, %p3455_p8  ;;  %p3067_p4 = por %p3066_p9, %p3065_p7 }
  0x4a   : > { %p3061_p5 = pneg %p3060_p2 }
  0x4c   : > { %p3068_p10 = pnand %p3067_p4, %p3061_p5 }
  0x4e   : > { %3071 = shalt.err (!%p3068_p10)
}
  0x4f   : > { %2804 = dma.hbm_to_vmem [thread:$0]  (!%p3439_p6), %s3945_s7, 1024, %s3443_s19, [#allocation9], %s3923_s17, %s3923_s17, %s3925_s14  }
  0x50   : > { %s3072_s22 = scalar_lea.hbm %s3916_s13, 4096 }
  0x51   : > { %p3073_p11 = scmp.ne.s32.totalorder %s3916_s13, %s3072_s22  ;;  %p3079_p0 = scmp.lt.u32.totalorder %s3072_s22, %s3916_s13 }
  0x53   : > { %p3075_p12 = pnand %p3073_p11, %p3455_p8 }
  0x55   : > { %p3076_p13 = pneg %p3075_p12 }
  0x57   : > { %p3081_p2 = pnand %p3079_p0, %p3076_p13 }
  0x59   : > { %3084 = shalt.err (!%p3081_p2)
}
  0x5a   : > { %s3085_s19 = scalar_lea.vmem %s3445_s21, 4096  ;;  %p3093_p4 = scmp.lt.s32.totalorder %s3445_s21, %s3445_s21 }
  0x5b   : > { %p3086_p5 = scmp.ne.s32.totalorder %s3445_s21, %s3085_s19  ;;  %p3094_p10 = scmp.lt.s32.totalorder %s3085_s19, %s3085_s19 }
  0x5d   : > { %p3088_p7 = pnand %p3086_p5, %p3455_p8  ;;  %p3095_p11 = por %p3094_p10, %p3093_p4 }
  0x5f   : > { %p3089_p9 = pneg %p3088_p7 }
  0x61   : > { %p3096_p12 = pnand %p3095_p11, %p3089_p9 }
  0x63   : > { %3099 = shalt.err (!%p3096_p12)
}
  0x64   : > { %s3299_s29 = smov 256   ;;  %s3300_s8 = smov 16  }
  0x65   : > { %2810 = dma.hbm_to_vmem [thread:$0]  (!%p3439_p6), %s3916_s13, 4096, %s3445_s21, [#allocation12], %s3299_s29, %s3299_s29, %s3300_s8  }
  0x66   : > { %s3301_s12 = smov [#allocation7]   ;;  %s3302_s23 = smov [#allocation10]  }
  0x67   : > { %s463_s22 = sshll.u32 %s3301_s12, 4  ;;  %s495_s28 = sshll.u32 %s3302_s23, 4  ;;  %s464_s22 = int_to_ptr.vmem [resolvable:$true] %s463_s22  ;;  %s496_s28 = int_to_ptr.vmem [resolvable:$true] %s495_s28 }
  0x68   : > { %s3100_s19 = scalar_lea.hbm %s3908_s5, 1024 }
  0x69   : > { %p3101_p13 = scmp.ne.s32.totalorder %s3908_s5, %s3100_s19  ;;  %p3107_p5 = scmp.lt.u32.totalorder %s3100_s19, %s3908_s5 }
  0x6b   : > { %p3103_p0 = pnand %p3101_p13, %p3455_p8 }
  0x6d   : > { %p3104_p2 = pneg %p3103_p0 }
  0x6f   : > { %p3109_p7 = pnand %p3107_p5, %p3104_p2 }
  0x71   : > { %3112 = shalt.err (!%p3109_p7)
}
  0x72   : > { %s3113_s21 = scalar_lea.vmem %s464_s22, 1024  ;;  %p3121_p11 = scmp.lt.s32.totalorder %s464_s22, %s464_s22 }
  0x73   : > { %p3114_p9 = scmp.ne.s32.totalorder %s464_s22, %s3113_s21  ;;  %p3122_p12 = scmp.lt.s32.totalorder %s3113_s21, %s3113_s21 }
  0x75   : > { %p3116_p4 = pnand %p3114_p9, %p3455_p8  ;;  %p3123_p1 = por %p3122_p12, %p3121_p11 }
  0x77   : > { %p3117_p10 = pneg %p3116_p4 }
  0x79   : > { %p3124_p3 = pnand %p3123_p1, %p3117_p10 }
  0x7b   : > { %3127 = shalt.err (!%p3124_p3)
}
  0x7c   : > { %s3946_s17 = smov 4   ;;  %s3947_s14 = smov 64  }
  0x7d   : > { %2801 = dma.hbm_to_vmem [thread:$0]  (!%p3439_p6), %s3908_s5, 1024, %s464_s22, [#allocation6], %s3947_s14, %s3947_s14, %s3946_s17  }
  0x7e   : > { %s3128_s10 = scalar_lea.hbm %s3912_s9, 1024 }
  0x7f   : > { %p3129_p1 = scmp.ne.s32.totalorder %s3912_s9, %s3128_s10  ;;  %p3135_p0 = scmp.lt.u32.totalorder %s3128_s10, %s3912_s9 }
  0x81   : > { %p3131_p3 = pnand %p3129_p1, %p3455_p8 }
  0x83   : > { %p3132_p13 = pneg %p3131_p3 }
  0x85   : > { %p3137_p2 = pnand %p3135_p0, %p3132_p13 }
  0x87   : > { %3140 = shalt.err (!%p3137_p2)
}
  0x88   : > { %s3141_s16 = scalar_lea.vmem %s496_s28, 1024  ;;  %p3149_p4 = scmp.lt.s32.totalorder %s496_s28, %s496_s28 }
  0x89   : > { %p3142_p5 = scmp.ne.s32.totalorder %s496_s28, %s3141_s16  ;;  %p3150_p10 = scmp.lt.s32.totalorder %s3141_s16, %s3141_s16 }
  0x8b   : > { %p3144_p7 = pnand %p3142_p5, %p3455_p8  ;;  %p3151_p11 = por %p3150_p10, %p3149_p4 }
  0x8d   : > { %p3145_p9 = pneg %p3144_p7 }
  0x8f   : > { %p3152_p12 = pnand %p3151_p11, %p3145_p9 }
  0x91   : > { %3155 = shalt.err (!%p3152_p12)
}
  0x92   : > { %2807 = dma.hbm_to_vmem [thread:$0]  (!%p3439_p6), %s3912_s9, 1024, %s496_s28, [#allocation9], %s3947_s14, %s3947_s14, %s3946_s17  }
  0x93   : > { %s3303_s21 = smov [#allocation13]   ;;  %s3156_s8 = scalar_lea.hbm %s3918_s15, 4096 }
  0x94   : > { %s533_s3 = sshll.u32 %s3303_s21, 4  ;;  %p3157_p1 = scmp.ne.s32.totalorder %s3918_s15, %s3156_s8  ;;  %s534_s3 = int_to_ptr.vmem [resolvable:$true] %s533_s3 }
  0x95   : > { %p3163_p0 = scmp.lt.u32.totalorder %s3156_s8, %s3918_s15 }
  0x96   : > { %p3159_p3 = pnand %p3157_p1, %p3455_p8 }
  0x98   : > { %p3160_p13 = pneg %p3159_p3 }
  0x9a   : > { %p3165_p2 = pnand %p3163_p0, %p3160_p13 }
  0x9c   : > { %3168 = shalt.err (!%p3165_p2)
}
  0x9d   : > { %s3169_s28 = scalar_lea.vmem %s534_s3, 4096  ;;  %p3177_p4 = scmp.lt.s32.totalorder %s534_s3, %s534_s3 }
  0x9e   : > { %p3170_p5 = scmp.ne.s32.totalorder %s534_s3, %s3169_s28  ;;  %p3178_p10 = scmp.lt.s32.totalorder %s3169_s28, %s3169_s28 }
  0xa0   : > { %p3172_p7 = pnand %p3170_p5, %p3455_p8  ;;  %p3179_p11 = por %p3178_p10, %p3177_p4 }
  0xa2   : > { %p3173_p9 = pneg %p3172_p7 }
  0xa4   : > { %p3180_p12 = pnand %p3179_p11, %p3173_p9 }
  0xa6   : > { %3183 = shalt.err (!%p3180_p12)
}
  0xa7   : > { %2813 = dma.hbm_to_vmem [thread:$0]  (!%p3439_p6), %s3918_s15, 4096, %s534_s3, [#allocation12], %s3947_s14, %s3947_s14, %s3946_s17  }
  0xa8   : > { %s2406_s1 = sadd.s32 4294967294, %s3292_s27   ;;  %s3593_s18 = sadd.s32 1, %s3292_s27  }
  0xa9   : > { %s40_s22 = ssub.s32 %s3292_s27, %s3593_s18  ;;  %s43_s19 = sadd.s32 1, %s3288_s26 }
  0xaa   : > { %p41_p8 = scmp.eq.s32.totalorder %s40_s22, 0  ;;  %p50_p1 = scmp.ne.s32.totalorder %s3288_s26, %s3284_s25 }
  0xab   : > { %p51_p3 = scmp.eq.s32.totalorder %s3292_s27, 0  ;;  %p56_p13 = scmp.ne.s32.totalorder %s3284_s25, %s3280_s24 }
  0xac   : > { %s3604_s21 = scalar_select %p41_p8, %s3288_s26, %s43_s19  }
  0xad   : > { %p3606_p0 = por %p51_p3, %p50_p1  ;;  %p3949_p2 = scmp.eq.s32.totalorder %s3423_s0, 0 }
  0xae   : > { %p416_p5 = scmp.eq.s32.totalorder %s3423_s0, 1  ;;  %p422_p7 = scmp.eq.s32.totalorder %s2406_s1, 1 }
  0xaf   : > { %p3612_p6 = por %p3949_p2, %p56_p13  ;;  %p2828_p9 = scmp.lt.s32.totalorder %s3292_s27, 2 }
  0xb0   : > { %s550_s14 = sand.u32 1, %s3288_s26   ;;  %p3619_p4 = por %p416_p5, %p50_p1 }
  0xb1   : > { %p3623_p10 = por %p422_p7, %p56_p13  ;;  %s2415_s8 = sshll.u32 %s550_s14, 3 }
  0xb2   : > { %s3951_s3 = scalar_select %p3619_p4, 1, 0 }
  0xb3   : > { %s3952_s29 = scalar_select %p3623_p10, 1, 0 }
  0xb4   : > { %s2416_s10 = sshll.u32 %s3292_s27, 7  ;;  %s3953_s23 = sld [smem:[#allocation20_spill]] }
  0xb5   : > { %s554_s20 = scalar_lea.vmem [#allocation2], %s2415_s8  ;;  %p3637_p11 = pnand %p2828_p9, %p3606_p0 }
  0xb6   : > { %s561_s16 = sshll.u32 %s554_s20, 4  ;;  %s551_s22 = scalar_lea.sflag [#allocation3], %s550_s14  ;;  %s3633_s16 = int_to_ptr.vmem [resolvable:$true] %s561_s16 }
  0xb7   : > { %p3186_p8 = pneg %p3637_p11 }
  0xba   : > { %s3631_s28 = scalar_lea.hbm %s3953_s23, %s2416_s10  ;;  %s3189_s11 = scalar_lea.hbm %s3953_s23, 256 }
  0xbb   : > { %s3184_s19 = scalar_lea.hbm %s3631_s28, 128  ;;  %p3190_p13 = scmp.lt.u32.totalorder %s3631_s28, %s3953_s23 }
  0xbc   : > { %p3185_p12 = scmp.ne.s32.totalorder %s3631_s28, %s3184_s19  ;;  %p3191_p0 = scmp.lt.u32.totalorder %s3189_s11, %s3184_s19 }
  0xbd   : > { %p3193_p5 = scmp.lt.u32.totalorder %s3184_s19, %s3631_s28 }
  0xbe   : > { %p3187_p1 = pnand %p3186_p8, %p3185_p12  ;;  %p3192_p2 = por %p3191_p0, %p3190_p13 }
  0xc0   : > { %p3188_p3 = pneg %p3187_p1  ;;  %p3194_p7 = por %p3193_p5, %p3192_p2 }
  0xc2   : > { %p3195_p9 = pnand %p3194_p7, %p3188_p3 }
  0xc4   : > { %3198 = shalt.err (!%p3195_p9)
}
  0xc5   : > { %s3199_s14 = scalar_lea.vmem %s3633_s16, 128  ;;  %s3304_s20 = smov [#allocation2]  }
  0xc6   : > { %p3200_p12 = scmp.ne.s32.totalorder %s3633_s16, %s3199_s14  ;;  %s3204_s8 = sshll.u32 %s3304_s20, 4  ;;  %s3205_s8 = int_to_ptr.vmem [resolvable:$false] %s3204_s8 }
  0xc7   : > { %s3206_s10 = scalar_lea.vmem %s3205_s8, 256  ;;  %p3207_p4 = scmp.lt.s32.totalorder %s3633_s16, %s3205_s8 }
  0xc8   : > { %p3202_p1 = pnand %p3200_p12, %p3186_p8  ;;  %p3208_p13 = scmp.lt.s32.totalorder %s3206_s10, %s3199_s14 }
  0xca   : > { %p3203_p10 = pneg %p3202_p1  ;;  %p3209_p0 = por %p3208_p13, %p3207_p4 }
  0xcc   : > { %p3210_p2 = pnand %p3209_p0, %p3203_p10 }
  0xce   : > { %3213 = shalt.err (!%p3210_p2)
}
  0xcf   : > { %2817 = dma.hbm_to_vmem [thread:$0]  (!%p3637_p11), %s3631_s28, 128, %s3633_s16, %s551_s22  }
  0xd0   : > { %p3955_p3 = scmp.ne.s32.totalorder %s3941_s30, 0 }
  0xd1   : > { %s3669_s19 = sand.u32 (!%p3955_p3), 1, %s3284_s25  }
  0xd2   : > { %570 = sbr.rel (%p3955_p3) target bundleno = 4215 (0x1077), region = 88  ;;  %s2418_s11 = sshll.u32 (!%p3955_p3), %s3669_s19, 3 }
  0xd3   : > { %s573_s7 = scalar_lea.sflag (!%p3955_p3), [#allocation3], %s3669_s19  ;;  %s576_s12 = scalar_lea.vmem (!%p3955_p3), [#allocation2], %s2418_s11 }
  0xd9   : > { %3259 = dma.done.wait (%p3612_p6), %s573_s7, 128  }
  0xda   : > { %3261 = vsyncadd (%p3612_p6), %s573_s7, 4294967168  ;;  %p3956_p4 = scmp.eq.s32.totalorder %s3423_s0, 0 }
  0xdc   : > { %3263 = dma.done.wait (%p3956_p4), [#allocation6], 2048   ;;  %p3957_p10 = pmov %p3956_p4 }
  0xdd   : > { %p3958_p11 = pmov %p3956_p4 }
  0xde   : > { %3265 = vsyncadd (%p3957_p10), [#allocation6], 4294965248 }
  0xdf   : > { %3267 = dma.done.wait (%p3958_p11), [#allocation9], 2048   ;;  %p3959_p8 = pmov %p3956_p4 }
  0xe0   : > { %p3960_p5 = pmov %p3956_p4 }
  0xe1   : > { %3269 = vsyncadd (%p3959_p8), [#allocation9], 4294965248 }
  0xe2   : > { %3271 = dma.done.wait (%p3960_p5), [#allocation12], 8192   ;;  %p3961_p7 = pmov %p3956_p4 }
  0xe3   : > { %v3691_v0 = vld [vmem:[%s576_s12] sm:$0xff]  ;;  %v2884_v1 = vld [vmem:[#allocation5] sm:$0xff]   ;;  %v3305_v3 = vmov 0.0   ;;  %v2886_v4 = vld [vmem:[#allocation5 + $0x8] sm:$0xff]   ;;  %vm3306_vm0 = vmmov 0   ;;  %s3962_s28 = sld [smem:[#allocation21_spill]] }
  0xe4   : > { %3273 = vsyncadd (%p3961_p7), [#allocation12], 4294959104  ;;  %655 = vadd.xlane.f32.xlu0 %v3691_v0  ;;  %v2885_v2 = vld [vmem:[#allocation7] sm:$0xff]   ;;  %2639 = vmatprep.subr.bf16.mxu0 %v3305_v3  ;;  %v2887_v5 = vld [vmem:[#allocation7 + $0x8] sm:$0xff]   ;;  %vm1018_vm1 = vcmask 261120   ;;  %s3307_s10 = smov 96  }
  0xe5   : > { %2659 = vmatprep.subr.bf16.mxu1 %v3305_v3  ;;  %2640 = vmatpush3.bf16.msra.mxu0 %v2884_v1  ;;  %v2888_v6 = vld [vmem:[#allocation5 + $0x10] sm:$0xff]   ;;  %v2890_v12 = vld [vmem:[#allocation5 + $0x18] sm:$0xff]   ;;  %v2892_v14 = vld [vmem:[#allocation5 + $0x20] sm:$0xff]   ;;  %s3963_s30 = sld [smem:[#allocation24_spill]]  ;;  %vm1081_vm2 = vcmask 1043456   ;;  %vm1065_vm3 = vcmask 64512  }
  0xe6   : > { %2660 = vmatpush3.bf16.msra.mxu1 %v2885_v2  ;;  %2641 = vmatprep.subr.bf16.mxu0 %v3305_v3  ;;  %v2889_v11 = vld [vmem:[#allocation7 + $0x10] sm:$0xff]   ;;  %v2891_v13 = vld [vmem:[#allocation7 + $0x18] sm:$0xff]   ;;  %v2893_v15 = vld [vmem:[#allocation7 + $0x20] sm:$0xff]   ;;  %s3308_s17 = smov 64   ;;  %vm1471_vm4 = vcmask 523264   ;;  %vm1473_vm5 = vcmask 785408  }
  0xe7   : > { %2661 = vmatprep.subr.bf16.mxu1 %v3305_v3  ;;  %2655 = vmatprep.mubr.msk.bf16.mxu0 %vm3306_vm0, %v3305_v3  ;;  %v2894_v16 = vld [vmem:[#allocation5 + $0x28] sm:$0xff]   ;;  %v2896_v18 = vld [vmem:[#allocation5 + $0x30] sm:$0xff]   ;;  %v2898_v20 = vld [vmem:[#allocation5 + $0x38] sm:$0xff]   ;;  %s3964_s22 = sld [smem:[#allocation25_spill]]  ;;  %s3965_s8 = sld [smem:[#allocation26_spill]] }
  0xe8   : > { %2675 = vmatprep.mubr.msk.bf16.mxu1 %vm3306_vm0, %v3305_v3  ;;  %v2895_v17 = vld [vmem:[#allocation7 + $0x28] sm:$0xff]   ;;  %v2897_v19 = vld [vmem:[#allocation7 + $0x30] sm:$0xff]   ;;  %v2899_v21 = vld [vmem:[#allocation7 + $0x38] sm:$0xff]   ;;  %s3966_s12 = sld [smem:[#allocation27_spill]]  ;;  %s2540_s14 = sshll.u32 %s3423_s0, 7 }
  0xe9   : > { %2642 = vmatpush3.bf16.msra.mxu0 %v2886_v4  ;;  %v2426_v26 = vld [vmem:[%s3962_s28] ss:$0 sm:$0xff]  ;;  %v2900_v31 = vld [vmem:[#allocation8] sm:$0xff]   ;;  %v2901_v33 = vld [vmem:[#allocation8 + $0x8] sm:$0xff]   ;;  %s3309_s28 = smov 32   ;;  %s650_s20 = scalar_lea.vmem [#allocation14], %s2418_s11 }
  0xea   : > { %2662 = vmatpush3.bf16.msra.mxu1 %v2887_v5  ;;  %2643 = vmatprep.subr.bf16.mxu0 %v3305_v3  ;;  %v2427_v28 = vld [vmem:[%s3905_s2] ss:$0 sm:$0xff]  ;;  %v2903_v35 = vld [vmem:[#allocation8 + $0x18] sm:$0xff]   ;;  %v2904_v36 = vld [vmem:[#allocation8 + $0x20] sm:$0xff]   ;;  %p3970_p9 = scmp.ne.s32.totalorder %s3951_s3, 0  ;;  %s3311_s0 = smov [#allocation14]  }
  0xeb   : > { %2663 = vmatprep.subr.bf16.mxu1 %v3305_v3  ;;  %v2902_v34 = vld [vmem:[#allocation8 + $0x10] sm:$0xff]   ;;  %v2905_v37 = vld [vmem:[#allocation8 + $0x28] sm:$0xff]   ;;  %v2907_v39 = vld [vmem:[#allocation8 + $0x38] sm:$0xff]   ;;  %s3218_s11 = sshll.u32 %s3311_s0, 4  ;;  %s3219_s11 = int_to_ptr.vmem [resolvable:$false] %s3218_s11 }
  0xec   : > { %v2906_v38 = vld [vmem:[#allocation8 + $0x30] sm:$0xff]   ;;  %s3220_s16 = scalar_lea.vmem %s3219_s11, 256 }
  0xed   : > { %2644 = vmatpush3.bf16.msra.mxu0 %v2888_v6  ;;  %v2437_v40 = vld [vmem:[%s3909_s6] ss:$0 sm:$0xff] }
  0xee   : > { %2645 = vmatprep.subr.bf16.mxu0 %v3305_v3  ;;  %2664 = vmatpush3.bf16.msra.mxu1 %v2889_v11  ;;  %v2428_v51 = vld [vmem:[%s3907_s4] ss:$0 sm:$0xff] }
  0xef   : > { %2665 = vmatprep.subr.bf16.mxu1 %v3305_v3  ;;  %v2446_v55 = vld [vmem:[%s3963_s30] ss:$0 sm:$0xff] }
  0xf1   : > { %2646 = vmatpush3.bf16.msra.mxu0 %v2890_v12 }
  0xf2   : > { %2666 = vmatpush3.bf16.msra.mxu1 %v2891_v13  ;;  %2647 = vmatprep.subr.bf16.mxu0 %v3305_v3 }
  0xf3   : > { %2667 = vmatprep.subr.bf16.mxu1 %v3305_v3 }
  0xf5   : > { %2648 = vmatpush3.bf16.msra.mxu0 %v2892_v14 }
  0xf6   : > { %2668 = vmatpush3.bf16.msra.mxu1 %v2893_v15  ;;  %2649 = vmatprep.subr.bf16.mxu0 %v3305_v3 }
  0xf7   : > { %2669 = vmatprep.subr.bf16.mxu1 %v3305_v3 }
  0xf9   : > { %2650 = vmatpush3.bf16.msra.mxu0 %v2894_v16 }
  0xfa   : > { %2670 = vmatpush3.bf16.msra.mxu1 %v2895_v17  ;;  %2651 = vmatprep.subr.bf16.mxu0 %v3305_v3 }
  0xfb   : > { %2671 = vmatprep.subr.bf16.mxu1 %v3305_v3 }
  0xfd   : > { %2652 = vmatpush3.bf16.msra.mxu0 %v2896_v18 }
  0xfe   : > { %2672 = vmatpush3.bf16.msra.mxu1 %v2897_v19  ;;  %2653 = vmatprep.subr.bf16.mxu0 %v3305_v3 }
  0xff   : > { %2673 = vmatprep.subr.bf16.mxu1 %v3305_v3 }
 0x101   : > { %2654 = vmatpush3.bf16.msra.mxu0 %v2898_v20 }
 0x102   : > { %2674 = vmatpush3.bf16.msra.mxu1 %v2899_v21  ;;  %2679 = vmatprep.subr.bf16.mxu0 %v3305_v3 }
 0x103   : > { %2699 = vmatprep.subr.bf16.mxu1 %v3305_v3 }
 0x171   : > { %v656_v7 = vpop.xlane.xlu0 %655 }
 0x172   : > { %v658_v8 = vmul.f32 0.0078125, %v656_v7 }
 0x174   : > { %v659_v9 = vsub.f32 %v3691_v0, %v658_v8 }
 0x176   : > { %v660_v10 = vmul.f32 %v659_v9, %v659_v9 }
 0x178   : > { %661 = vadd.xlane.f32.xlu0 %v660_v10 }
 0x205   : > { %v662_v22 = vpop.xlane.xlu0 %661 }
 0x206   : > { %v663_v23 = vmul.f32 0.0078125, %v662_v22 }
 0x208   : > { %v664_v24 = vadd.f32 1e-05, %v663_v23 }
 0x20a   : > { %2996 = vrsqrt.f32 %v664_v24 }
 0x214   : > { %v2997_v25 = vpop.eup %2996 }
 0x215   : > { %v666_v27 = vmul.f32 %v2997_v25, %v659_v9 }
 0x217   : > { %v673_v29 = vmul.f32 %v2426_v26, %v666_v27 }
 0x219   : > { %v680_v30 = vadd.f32 %v2427_v28, %v673_v29 }
 0x21b   : > { %v681_v32 = vpack.c.bf16 %v680_v30, %v680_v30 }
 0x21d   : > { %2656 = vmatmul.mubr.bf16.vlgmr.msra.gmra.mrb[0].mxu0 %v681_v32  ;;  %2676 = vmatmul.mubr.bf16.vlgmr.msra.gmra.mrb[0].mxu1 %v681_v32 }
 0x21e   : > { %2680 = vmatpush3.bf16.msra.mxu0 %v2900_v31  ;;  %2695 = vmatprep.mubr.msk.bf16.mxu0 %vm3306_vm0, %v3305_v3 }
 0x21f   : > { %2681 = vmatprep.subr.bf16.mxu0 %v3305_v3  ;;  %2701 = vmatprep.mubr.msk.bf16.mxu1 %vm3306_vm0, %v3305_v3 }
 0x222   : > { %2682 = vmatpush3.bf16.msra.mxu0 %v2901_v33 }
 0x223   : > { %2683 = vmatprep.subr.bf16.mxu0 %v3305_v3 }
 0x226   : > { %2684 = vmatpush3.bf16.msra.mxu0 %v2902_v34 }
 0x227   : > { %2685 = vmatprep.subr.bf16.mxu0 %v3305_v3 }
 0x22a   : > { %2686 = vmatpush3.bf16.msra.mxu0 %v2903_v35 }
 0x22b   : > { %2687 = vmatprep.subr.bf16.mxu0 %v3305_v3 }
 0x22e   : > { %2688 = vmatpush3.bf16.msra.mxu0 %v2904_v36 }
 0x22f   : > { %2689 = vmatprep.subr.bf16.mxu0 %v3305_v3 }
 0x232   : > { %2690 = vmatpush3.bf16.msra.mxu0 %v2905_v37 }
 0x233   : > { %2691 = vmatprep.subr.bf16.mxu0 %v3305_v3 }
 0x236   : > { %2692 = vmatpush3.bf16.msra.mxu0 %v2906_v38 }
 0x237   : > { %2693 = vmatprep.subr.bf16.mxu0 %v3305_v3 }
 0x23a   : > { %2694 = vmatpush3.bf16.msra.mxu0 %v2907_v39 }
 0x23b   : > { %2747 = vmatprep.subr.bf16.mxu0 %v3305_v3 }
 0x23d   : > { %2696 = vmatmul.mubr.bf16.vlgmr.msra.gmra.mrb[4].mxu0 %v681_v32 }
 0x23e   : > { %2763 = vmatprep.mubr.msk.bf16.mxu0 %vm3306_vm0, %v3305_v3 }
 0x2f0   : > { %v787_v41 = vpop.f32.mrb[0].mxu0  ;;  %v899_v42 = vpop.f32.mrb[0].mxu1 }
 0x2f1   : > { %v900_v43 = vadd.f32 %v2437_v40, %v899_v42  ;;  %v2657_v44 = vpop.f32.mrb[1].mxu0  ;;  %v2677_v45 = vpop.f32.mrb[1].mxu1  ;;  %v788_v53 = vadd.f32 %v2428_v51, %v787_v41 }
 0x2f2   : > { %v790_v46 = vpop.f32.mrb[2].mxu0  ;;  %v902_v47 = vpop.f32.mrb[2].mxu1 }
 0x2f3   : > { %v3740_v48 = vpack.c.bf16 %v900_v43, %v900_v43  ;;  %v2658_v49 = vpop.f32.mrb[3].mxu0  ;;  %v2678_v50 = vpop.f32.mrb[3].mxu1  ;;  %v3750_v54 = vpack.c.bf16 %v788_v53, %v788_v53 }
 0x2f5   : > { %1129 = vrot.lane.b32.xlu0 %v3740_v48, %s3307_s10  ;;  %v1023_v52 = vsel %vm1018_vm1, %v3740_v48, 0 }
 0x2f6   : > { %2700 = vmatpush3.bf16.xpose.msra.mxu1 %v1023_v52 }
 0x2f7   : > { %2705 = vmatprep.subr.bf16.mxu1 %v3305_v3 }
 0x2fd   : > { %2702 = vmatmul.mubr.msk.bf16.vlgmr.msra.gmra.mrb[4].mxu1 %vm1018_vm1, %v3750_v54 }
 0x2fe   : > { %2707 = vmatprep.mubr.msk.bf16.mxu1 %vm3306_vm0, %v3305_v3 }
 0x310   : > { %v1011_v56 = vpop.f32.mrb[4].mxu0 }
 0x311   : > { %v1012_v57 = vadd.f32 %v2446_v55, %v1011_v56  ;;  %v2697_v58 = vpop.f32.mrb[5].mxu0 }
 0x312   : > { %v1014_v59 = vpop.f32.mrb[6].mxu0 }
 0x313   : > { %v3759_v60 = vpack.c.bf16 %v1012_v57, %v1012_v57  ;;  %v2698_v61 = vpop.f32.mrb[7].mxu0 }
 0x315   : > { %v1083_v62 = vsel %vm1081_vm2, %v3759_v60, 0 }
 0x316   : > { %2706 = vmatpush3.bf16.msra.mxu1 %v1083_v62 }
 0x317   : > { %2711 = vmatprep.subr.bf16.mxu1 %v3305_v3 }
 0x367   : > { %v1130_v14 = vpop.permute.xlu0 %1129 }
 0x368   : > { %v1135_v16 = vsel %vm1018_vm1, %v1130_v14, 0 }
 0x3d0   : > { %v1059_v63 = vpop.f32.mrb[4].mxu1 }
 0x3d1   : > { %v2703_v1 = vpop.f32.mrb[5].mxu1  ;;  %v1066_v2 = vsel %vm1065_vm3, %v1059_v63, -inf }
 0x3d2   : > { %1067 = vmax.xlane.f32.xlu1 %v1066_v2  ;;  %v1062_v4 = vpop.f32.mrb[6].mxu1 }
 0x3d3   : > { %v2704_v5 = vpop.f32.mrb[7].mxu1 }
 0x45f   : > { %v1068_v6 = vpop.xlane.xlu1 %1067 }
 0x460   : > { %v1069_v7 = vsub.f32 %v1059_v63, %v1068_v6 }
 0x462   : > { %v1070_v8 = vmul.f32 1.442695, %v1069_v7 }
 0x464   : > { %2998 = vpow2.f32 %v1070_v8 }
 0x46e   : > { %v2999_v9 = vpop.eup %2998 }
 0x46f   : > { %v1072_v10 = vsel %vm1065_vm3, %v2999_v9, 0.0 }
 0x470   : > { %1073 = vadd.xlane.f32.xlu1 %v1072_v10 }
 0x481   : > { %1126 = vrot.lane.b32.xlu1 %v3750_v54, %s3307_s10 }
 0x4fd   : > { %v1074_v11 = vpop.xlane.xlu1 %1073 }
 0x4fe   : > { %3000 = vrcp.f32 %v1074_v11 }
 0x501   : > { %v1127_v17 = vpop.permute.xlu1 %1126 }
 0x508   : > { %v3001_v12 = vpop.eup %3000 }
 0x509   : > { %v1076_v13 = vmul.f32 %v3001_v12, %v2999_v9 }
 0x50b   : > { %v1077_v15 = vpack.c.bf16 %v1076_v13, %v1076_v13 }
 0x50d   : > { %2708 = vmatmul.mubr.msk.bf16.vlgmr.msra.gmra.mrb[8].mxu1 %vm1065_vm3, %v1077_v15 }
 0x50e   : > { %2712 = vmatpush3.bf16.xpose.msra.mxu1 %v1135_v16  ;;  %2713 = vmatprep.mubr.msk.bf16.mxu1 %vm3306_vm0, %v3305_v3 }
 0x50f   : > { %2717 = vmatprep.subr.bf16.mxu1 %v3305_v3 }
 0x515   : > { %2714 = vmatmul.mubr.msk.bf16.vlgmr.msra.gmra.mrb[12].mxu1 %vm1018_vm1, %v1127_v17 }
 0x516   : > { %2719 = vmatprep.mubr.msk.bf16.mxu1 %vm3306_vm0, %v3305_v3 }
 0x5e0   : > { %v3776_v18 = vpop.f32.mrb[8].mxu1 }
 0x5e1   : > { %v2709_v19 = vpop.f32.mrb[9].mxu1 }
 0x5e2   : > { %v1122_v20 = vpop.f32.mrb[10].mxu1 }
 0x5e3   : > { %v2710_v21 = vpop.f32.mrb[11].mxu1 }
 0x5e8   : > { %v1171_v22 = vpop.f32.mrb[12].mxu1 }
 0x5e9   : > { %v2715_v23 = vpop.f32.mrb[13].mxu1  ;;  %v1177_v24 = vsel %vm1065_vm3, %v1171_v22, -inf }
 0x5ea   : > { %1178 = vmax.xlane.f32.xlu1 %v1177_v24  ;;  %v1174_v25 = vpop.f32.mrb[14].mxu1  ;;  %v2908_v23 = vld [vmem:[#allocation10] sm:$0xff]   ;;  %v2909_v24 = vld [vmem:[#allocation10 + $0x8] sm:$0xff]  }
 0x5eb   : > { %v2716_v26 = vpop.f32.mrb[15].mxu1  ;;  %2748 = vmatpush3.bf16.msra.mxu0 %v2908_v23  ;;  %v2910_v25 = vld [vmem:[#allocation10 + $0x10] sm:$0xff]   ;;  %v2965_v23 = vld [vmem:[#allocation13 + $0xc0] sm:$0xff]  }
 0x5ec   : > { %2749 = vmatprep.subr.bf16.mxu0 %v3305_v3  ;;  %v2911_v26 = vld [vmem:[#allocation10 + $0x18] sm:$0xff]  }
 0x5ef   : > { %2750 = vmatpush3.bf16.msra.mxu0 %v2909_v24 }
 0x5f0   : > { %2751 = vmatprep.subr.bf16.mxu0 %v3305_v3 }
 0x5f3   : > { %2752 = vmatpush3.bf16.msra.mxu0 %v2910_v25 }
 0x5f4   : > { %2753 = vmatprep.subr.bf16.mxu0 %v3305_v3 }
 0x5f7   : > { %2754 = vmatpush3.bf16.msra.mxu0 %v2911_v26 }
 0x5f8   : > { %2755 = vmatprep.subr.bf16.mxu0 %v3305_v3 }
 0x5fb   : > { %1240 = vrot.lane.b32.xlu1 %v3740_v48, %s3308_s17 }
 0x5ff   : > { %1238 = vrot.lane.b32.xlu1 %v3750_v54, %s3308_s17 }
 0x677   : > { %v1179_v27 = vpop.xlane.xlu1 %1178 }
 0x678   : > { %v1180_v28 = vsub.f32 %v1171_v22, %v1179_v27  ;;  %v2912_v27 = vld [vmem:[#allocation10 + $0x20] sm:$0xff]  }
 0x679   : > { %2756 = vmatpush3.bf16.msra.mxu0 %v2912_v27 }
 0x67a   : > { %v1181_v29 = vmul.f32 1.442695, %v1180_v28  ;;  %v2913_v28 = vld [vmem:[#allocation10 + $0x28] sm:$0xff]   ;;  %2757 = vmatprep.subr.bf16.mxu0 %v3305_v3 }
 0x67b   : > { %v1241_v37 = vpop.permute.xlu1 %1240 }
 0x67c   : > { %3002 = vpow2.f32 %v1181_v29  ;;  %v1246_v39 = vsel %vm1018_vm1, %v1241_v37, 0  ;;  %v2914_v29 = vld [vmem:[#allocation10 + $0x30] sm:$0xff]  }
 0x67d   : > { %2758 = vmatpush3.bf16.msra.mxu0 %v2913_v28  ;;  %v2472_v28 = vld [vmem:[%s3965_s8] ss:$0 sm:$0xff]  ;;  %s2279_s8 = sshll.u32 %s650_s20, 4  ;;  %s3861_s8 = int_to_ptr.vmem [resolvable:$true] %s2279_s8 }
 0x67e   : > { %2759 = vmatprep.subr.bf16.mxu0 %v3305_v3  ;;  %p3221_p13 = scmp.lt.s32.totalorder %s3861_s8, %s3219_s11 }
 0x67f   : > { %v1239_v40 = vpop.permute.xlu1 %1238 }
 0x681   : > { %2760 = vmatpush3.bf16.msra.mxu0 %v2914_v29 }
 0x682   : > { %2761 = vmatprep.subr.bf16.mxu0 %v3305_v3 }
 0x686   : > { %v3003_v30 = vpop.eup %3002 }
 0x687   : > { %v1183_v31 = vsel %vm1065_vm3, %v3003_v30, 0.0 }
 0x688   : > { %1184 = vadd.xlane.f32.xlu0 %v1183_v31 }
 0x69e   : > { %1190 = vrot.lane.b32.xlu0 %v3759_v60, %s3307_s10 }
 0x715   : > { %v1185_v32 = vpop.xlane.xlu0 %1184 }
 0x716   : > { %3004 = vrcp.f32 %v1185_v32 }
 0x719   : > { %v1191_v33 = vpop.permute.xlu0 %1190 }
 0x71a   : > { %v1196_v34 = vsel %vm1081_vm2, %v1191_v33, 0 }
 0x71b   : > { %2718 = vmatpush3.bf16.msra.mxu1 %v1196_v34 }
 0x71c   : > { %2723 = vmatprep.subr.bf16.mxu1 %v3305_v3 }
 0x720   : > { %v3005_v35 = vpop.eup %3004 }
 0x721   : > { %v1187_v36 = vmul.f32 %v3005_v35, %v3003_v30  ;;  %v2915_v30 = vld [vmem:[#allocation10 + $0x38] sm:$0xff]  }
 0x722   : > { %2762 = vmatpush3.bf16.msra.mxu0 %v2915_v30  ;;  %v2473_v30 = vld [vmem:[%s3966_s12] ss:$0 sm:$0xff]  ;;  %s3969_s12 = sld [smem:[#allocation30_spill]] }
 0x723   : > { %v1188_v38 = vpack.c.bf16 %v1187_v36, %v1187_v36 }
 0x725   : > { %2720 = vmatmul.mubr.msk.bf16.vlgmr.msra.gmra.mrb[16].mxu1 %vm1065_vm3, %v1188_v38 }
 0x726   : > { %2724 = vmatpush3.bf16.xpose.msra.mxu1 %v1246_v39  ;;  %2725 = vmatprep.mubr.msk.bf16.mxu1 %vm3306_vm0, %v3305_v3 }
 0x727   : > { %2729 = vmatprep.subr.bf16.mxu1 %v3305_v3 }
 0x728   : > { %s3859_s30 = scalar_lea.hbm %s3969_s12, %s2540_s14 }
 0x72d   : > { %2726 = vmatmul.mubr.msk.bf16.vlgmr.msra.gmra.mrb[20].mxu1 %vm1018_vm1, %v1239_v40 }
 0x72e   : > { %2731 = vmatprep.mubr.msk.bf16.mxu1 %vm3306_vm0, %v3305_v3 }
 0x7f8   : > { %v1232_v41 = vpop.f32.mrb[16].mxu1 }
 0x7f9   : > { %v2721_v42 = vpop.f32.mrb[17].mxu1 }
 0x7fa   : > { %v1235_v43 = vpop.f32.mrb[18].mxu1 }
 0x7fb   : > { %v2722_v44 = vpop.f32.mrb[19].mxu1 }
 0x800   : > { %v1282_v45 = vpop.f32.mrb[20].mxu1 }
 0x801   : > { %v2727_v46 = vpop.f32.mrb[21].mxu1  ;;  %v1288_v47 = vsel %vm1065_vm3, %v1282_v45, -inf }
 0x802   : > { %1289 = vmax.xlane.f32.xlu1 %v1288_v47  ;;  %v1285_v49 = vpop.f32.mrb[22].mxu1  ;;  %v2916_v47 = vld [vmem:[#allocation11] ss:$16 sps:$4 sm:$0xff]  }
 0x803   : > { %v2728_v50 = vpop.f32.mrb[23].mxu1  ;;  %v2918_v49 = vld [vmem:[#allocation11 + $0x4] ss:$16 sps:$4 sm:$0xff]  }
 0x804   : > { %v2919_v50 = vld [vmem:[#allocation11 + $0x8] ss:$16 sps:$4 sm:$0xff]  }
 0x813   : > { %1350 = vrot.lane.b32.xlu1 %v3740_v48, %s3309_s28 }
 0x817   : > { %1348 = vrot.lane.b32.xlu1 %v3750_v54, %s3309_s28 }
 0x88f   : > { %v1290_v51 = vpop.xlane.xlu1 %1289 }
 0x890   : > { %v1291_v52 = vsub.f32 %v1282_v45, %v1290_v51  ;;  %v2921_v51 = vld [vmem:[#allocation11 + $0xc] ss:$16 sps:$4 sm:$0xff]  }
 0x891   : > { %1871 = vmatprep.subr.bf16.mxu0 %v2921_v51  ;;  %v2983_v51 = vld [vmem:[#allocation13 + $0xa0] sm:$0xff]  }
 0x892   : > { %v1292_v53 = vmul.f32 1.442695, %v1291_v52  ;;  %v2924_v52 = vld [vmem:[#allocation11 + $0x24] ss:$16 sps:$4 sm:$0xff]  }
 0x893   : > { %v1351_v61 = vpop.permute.xlu1 %1350 }
 0x894   : > { %3006 = vpow2.f32 %v1292_v53  ;;  %v1356_v63 = vsel %vm1018_vm1, %v1351_v61, 0  ;;  %v2927_v53 = vld [vmem:[#allocation11 + $0x2c] ss:$16 sps:$4 sm:$0xff]  }
 0x897   : > { %v1349_v1 = vpop.permute.xlu1 %1348 }
 0x89e   : > { %v3007_v55 = vpop.eup %3006 }
 0x89f   : > { %v1294_v56 = vsel %vm1065_vm3, %v3007_v55, 0.0 }
 0x8a0   : > { %1295 = vadd.xlane.f32.xlu0 %v1294_v56  ;;  %v2925_v56 = vld [vmem:[#allocation11 + $0x28] ss:$16 sps:$4 sm:$0xff]  }
 0x8b6   : > { %1300 = vrot.lane.b32.xlu0 %v3759_v60, %s3308_s17 }
 0x92d   : > { %v1296_v57 = vpop.xlane.xlu0 %1295 }
 0x92e   : > { %3008 = vrcp.f32 %v1296_v57  ;;  %v2930_v57 = vld [vmem:[#allocation11 + $0x44] ss:$16 sps:$4 sm:$0xff]  }
 0x931   : > { %v1301_v58 = vpop.permute.xlu0 %1300 }
 0x932   : > { %v1306_v59 = vsel %vm1081_vm2, %v1301_v58, 0  ;;  %v2928_v58 = vld [vmem:[#allocation11 + $0x40] ss:$16 sps:$4 sm:$0xff]  }
 0x933   : > { %2730 = vmatpush3.bf16.msra.mxu1 %v1306_v59  ;;  %v2931_v59 = vld [vmem:[#allocation11 + $0x48] ss:$16 sps:$4 sm:$0xff]  }
 0x934   : > { %2735 = vmatprep.subr.bf16.mxu1 %v3305_v3 }
 0x938   : > { %v3009_v48 = vpop.eup %3008 }
 0x939   : > { %v1298_v54 = vmul.f32 %v3009_v48, %v3007_v55  ;;  %v2922_v55 = vld [vmem:[#allocation11 + $0x20] ss:$16 sps:$4 sm:$0xff]  }
 0x93b   : > { %v1299_v62 = vpack.c.bf16 %v1298_v54, %v1298_v54 }
 0x93d   : > { %2732 = vmatmul.mubr.msk.bf16.vlgmr.msra.gmra.mrb[24].mxu1 %vm1065_vm3, %v1299_v62 }
 0x93e   : > { %2736 = vmatpush3.bf16.xpose.msra.mxu1 %v1356_v63  ;;  %2737 = vmatprep.mubr.msk.bf16.mxu1 %vm3306_vm0, %v3305_v3  ;;  %v2936_v63 = vld [vmem:[#allocation11 + $0x64] ss:$16 sps:$4 sm:$0xff]  }
 0x93f   : > { %2741 = vmatprep.subr.bf16.mxu1 %v3305_v3 }
 0x945   : > { %2738 = vmatmul.mubr.msk.bf16.vlgmr.msra.gmra.mrb[28].mxu1 %vm1018_vm1, %v1349_v1  ;;  %v2939_v1 = vld [vmem:[#allocation11 + $0x6c] ss:$16 sps:$4 sm:$0xff]  }
 0x946   : > { %2743 = vmatprep.mubr.msk.bf16.mxu1 %vm3306_vm0, %v3305_v3  ;;  %v2463_v3 = vld [vmem:[%s3964_s22] ss:$0 sm:$0xff]  ;;  %s3968_s22 = sld [smem:[#allocation29_spill]] }
 0xa10   : > { %v1342_v2 = vpop.f32.mrb[24].mxu1 }
 0xa11   : > { %v2733_v4 = vpop.f32.mrb[25].mxu1 }
 0xa12   : > { %v1345_v5 = vpop.f32.mrb[26].mxu1  ;;  %v2937_v4 = vld [vmem:[#allocation11 + $0x68] ss:$16 sps:$4 sm:$0xff]  }
 0xa13   : > { %v2734_v6 = vpop.f32.mrb[27].mxu1  ;;  %v2942_v5 = vld [vmem:[#allocation11 + $0x84] ss:$16 sps:$4 sm:$0xff]  }
 0xa14   : > { %v2945_v6 = vld [vmem:[#allocation11 + $0x8c] ss:$16 sps:$4 sm:$0xff]  }
 0xa18   : > { %v1392_v7 = vpop.f32.mrb[28].mxu1 }
 0xa19   : > { %v2739_v8 = vpop.f32.mrb[29].mxu1  ;;  %v1398_v9 = vsel %vm1065_vm3, %v1392_v7, -inf }
 0xa1a   : > { %1399 = vmax.xlane.f32.xlu0 %v1398_v9  ;;  %v1395_v10 = vpop.f32.mrb[30].mxu1  ;;  %v2943_v8 = vld [vmem:[#allocation11 + $0x88] ss:$16 sps:$4 sm:$0xff]   ;;  %v2948_v9 = vld [vmem:[#allocation11 + $0xa4] ss:$16 sps:$4 sm:$0xff]  }
 0xa1b   : > { %v2740_v11 = vpop.f32.mrb[31].mxu1  ;;  %v2951_v10 = vld [vmem:[#allocation11 + $0xac] ss:$16 sps:$4 sm:$0xff]  }
 0xa1c   : > { %v2946_v11 = vld [vmem:[#allocation11 + $0xa0] ss:$16 sps:$4 sm:$0xff]  }
 0xa30   : > { %1410 = vrot.lane.b32.xlu0 %v3759_v60, %s3309_s28 }
 0xa34   : > { %1463 = vrot.lane.b32.xlu0 %v1342_v2, %s3308_s17  ;;  %v2934_v2 = vld [vmem:[#allocation11 + $0x60] ss:$16 sps:$4 sm:$0xff]   ;;  %s2266_s17 = scalar_lea.sflag [#allocation4], %s3669_s19 }
 0xaa7   : > { %v1400_v12 = vpop.xlane.xlu0 %1399 }
 0xaa8   : > { %v1401_v13 = vsub.f32 %v1392_v7, %v1400_v12  ;;  %v2940_v7 = vld [vmem:[#allocation11 + $0x80] ss:$16 sps:$4 sm:$0xff]   ;;  %v2949_v12 = vld [vmem:[#allocation11 + $0xa8] ss:$16 sps:$4 sm:$0xff]  }
 0xaaa   : > { %v1402_v14 = vmul.f32 1.442695, %v1401_v13  ;;  %v2954_v13 = vld [vmem:[#allocation11 + $0xc4] ss:$16 sps:$4 sm:$0xff]  }
 0xaab   : > { %v1411_v15 = vpop.permute.xlu0 %1410 }
 0xaac   : > { %3010 = vpow2.f32 %v1402_v14  ;;  %v1416_v16 = vsel %vm1081_vm2, %v1411_v15, 0  ;;  %v2957_v14 = vld [vmem:[#allocation11 + $0xcc] ss:$16 sps:$4 sm:$0xff]   ;;  %v2952_v15 = vld [vmem:[#allocation11 + $0xc0] ss:$16 sps:$4 sm:$0xff]  }
 0xaad   : > { %2742 = vmatpush3.bf16.msra.mxu1 %v1416_v16  ;;  %v2955_v16 = vld [vmem:[#allocation11 + $0xc8] ss:$16 sps:$4 sm:$0xff]  }
 0xaae   : > { %1830 = vmatprep.subr.bf16.mxu1 %v2918_v49  ;;  %v2981_v49 = vld [vmem:[#allocation13 + $0xe0] sm:$0xff]  }
 0xaaf   : > { %v1464_v37 = vpop.permute.xlu0 %1463 }
 0xab6   : > { %v3011_v17 = vpop.eup %3010 }
 0xab7   : > { %v1404_v19 = vsel %vm1065_vm3, %v3011_v17, 0.0 }
 0xab8   : > { %1405 = vadd.xlane.f32.xlu1 %v1404_v19  ;;  %v2963_v19 = vld [vmem:[#allocation11 + $0xec] ss:$16 sps:$4 sm:$0xff]  }
 0xac9   : > { %1459 = vrot.lane.b32.xlu1 %v1232_v41, %s3309_s28  ;;  %s3967_s28 = sld [smem:[#allocation28_spill]] }
 0xb45   : > { %v1406_v20 = vpop.xlane.xlu1 %1405 }
 0xb46   : > { %3012 = vrcp.f32 %v1406_v20  ;;  %v2958_v20 = vld [vmem:[#allocation11 + $0xe0] ss:$16 sps:$4 sm:$0xff]  }
 0xb49   : > { %v1460_v35 = vpop.permute.xlu1 %1459 }
 0xb4a   : > { %v1470_v36 = vsel %vm1018_vm1, %v3776_v18, %v1460_v35 }
 0xb4b   : > { %v1472_v38 = vsel %vm1471_vm4, %v1470_v36, %v1464_v37  ;;  %v2968_v36 = vld [vmem:[#allocation13 + $0x48] sm:$0xff]  }
 0xb4c   : > { %v2969_v37 = vld [vmem:[#allocation13 + $0xc8] sm:$0xff]  }
 0xb50   : > { %v3013_v21 = vpop.eup %3012 }
 0xb51   : > { %v1408_v60 = vmul.f32 %v3013_v21, %v3011_v17  ;;  %v2960_v17 = vld [vmem:[#allocation11 + $0xe4] ss:$16 sps:$4 sm:$0xff]   ;;  %v2961_v21 = vld [vmem:[#allocation11 + $0xe8] ss:$16 sps:$4 sm:$0xff]  }
 0xb53   : > { %v1409_v22 = vpack.c.bf16 %v1408_v60, %v1408_v60  ;;  %v3310_v60 = vmov 0  }
 0xb55   : > { %2744 = vmatmul.mubr.msk.bf16.vlgmr.msra.gmra.mrb[32].mxu1 %vm1065_vm3, %v1409_v22  ;;  %v2964_v22 = vld [vmem:[#allocation13 + $0x40] sm:$0xff]  }
 0xb56   : > { %1831 = vmatpush1.bf16.msra.mxu1 %v2916_v47  ;;  %1862 = vmatprep.mubr.bf16.mxu1 %v3310_v60  ;;  %v2980_v47 = vld [vmem:[#allocation13 + $0x60] sm:$0xff]  }
 0xb57   : > { %1832 = vmatprep.subr.bf16.mxu1 %v2924_v52  ;;  %v2984_v52 = vld [vmem:[#allocation13 + $0x68] sm:$0xff]  }
 0xb5a   : > { %1833 = vmatpush1.bf16.msra.mxu1 %v2922_v55  ;;  %v2986_v55 = vld [vmem:[#allocation13 + $0x28] sm:$0xff]  }
 0xb5b   : > { %1834 = vmatprep.subr.bf16.mxu1 %v2930_v57  ;;  %v2988_v57 = vld [vmem:[#allocation13 + $0x70] sm:$0xff]  }
 0xb5e   : > { %1835 = vmatpush1.bf16.msra.mxu1 %v2928_v58  ;;  %v2990_v58 = vld [vmem:[#allocation13 + $0x30] sm:$0xff]  }
 0xb5f   : > { %1836 = vmatprep.subr.bf16.mxu1 %v2936_v63  ;;  %v1650_v63 = vlaneseq }
 0xb62   : > { %1837 = vmatpush1.bf16.msra.mxu1 %v2934_v2 }
 0xb63   : > { %1838 = vmatprep.subr.bf16.mxu1 %v2942_v5  ;;  %v1648_v5 = vld [vmem:[%s3967_s28] sm:$0xf]  ;;  %s3214_s28 = scalar_lea.vmem %s3861_s8, 128 }
 0xb64   : > { %p3215_p6 = scmp.ne.s32.totalorder %s3861_s8, %s3214_s28  ;;  %p3222_p0 = scmp.lt.s32.totalorder %s3220_s16, %s3214_s28 }
 0xb66   : > { %1839 = vmatpush1.bf16.msra.mxu1 %v2940_v7  ;;  %p3216_p12 = pnand %p3215_p6, %p3970_p9  ;;  %p3223_p2 = por %p3222_p0, %p3221_p13 }
 0xb67   : > { %1840 = vmatprep.subr.bf16.mxu1 %v2948_v9 }
 0xb68   : > { %p3217_p1 = pneg %p3216_p12 }
 0xb6a   : > { %1841 = vmatpush1.bf16.msra.mxu1 %v2946_v11  ;;  %p3224_p3 = pnand %p3223_p2, %p3217_p1 }
 0xb6b   : > { %1842 = vmatprep.subr.bf16.mxu1 %v2954_v13 }
 0xb6e   : > { %1843 = vmatpush1.bf16.msra.mxu1 %v2952_v15 }
 0xb6f   : > { %1844 = vmatprep.subr.bf16.mxu1 %v2960_v17 }
 0xb72   : > { %1845 = vmatpush1.bf16.msra.mxu1 %v2958_v20 }
 0xb73   : > { %2595 = vmatprep.subr.bf16.mxu1 %v2964_v22 }
 0xc28   : > { %v1452_v31 = vpop.f32.mrb[32].mxu1 }
 0xc29   : > { %1467 = vrot.lane.b32.xlu1 %v1452_v31, %s3307_s10  ;;  %v2745_v32 = vpop.f32.mrb[33].mxu1 }
 0xc2a   : > { %v1455_v33 = vpop.f32.mrb[34].mxu1 }
 0xc2b   : > { %v2746_v34 = vpop.f32.mrb[35].mxu1  ;;  %v2966_v33 = vld [vmem:[#allocation13] sm:$0xff]  }
 0xc2c   : > { %v2967_v34 = vld [vmem:[#allocation13 + $0x80] sm:$0xff]  }
 0xc9b   : > { %v1468_v39 = vpop.permute.xlu1 %1467 }
 0xc9c   : > { %v1474_v40 = vsel %vm1473_vm5, %v1472_v38, %v1468_v39  ;;  %v2970_v38 = vld [vmem:[#allocation13 + $0x8] sm:$0xff]  }
 0xc9d   : > { %v1475_v41 = vpack.c.bf16 %v1474_v40, %v1474_v40  ;;  %v2971_v39 = vld [vmem:[#allocation13 + $0x88] sm:$0xff]   ;;  %v2972_v40 = vld [vmem:[#allocation13 + $0x50] sm:$0xff]  }
 0xc9f   : > { %2764 = vmatmul.mubr.bf16.vlgmr.msra.gmra.mrb[8].mxu0 %v1475_v41  ;;  %v2973_v41 = vld [vmem:[#allocation13 + $0xd0] sm:$0xff]  }
 0xca0   : > { %1872 = vmatpush1.bf16.msra.mxu0 %v2919_v50  ;;  %1903 = vmatprep.mubr.bf16.mxu0 %v3310_v60  ;;  %v2982_v50 = vld [vmem:[#allocation13 + $0x20] sm:$0xff]  }
 0xca1   : > { %1873 = vmatprep.subr.bf16.mxu0 %v2927_v53  ;;  %v2985_v53 = vld [vmem:[#allocation13 + $0xe8] sm:$0xff]  }
 0xca4   : > { %1874 = vmatpush1.bf16.msra.mxu0 %v2925_v56  ;;  %v2987_v56 = vld [vmem:[#allocation13 + $0xa8] sm:$0xff]  }
 0xd72   : > { %v1581_v42 = vpop.f32.mrb[8].mxu0 }
 0xd73   : > { %v1582_v43 = vadd.f32 %v2463_v3, %v1581_v42  ;;  %v2765_v44 = vpop.f32.mrb[9].mxu0  ;;  %v2974_v3 = vld [vmem:[#allocation13 + $0x10] sm:$0xff]  }
 0xd74   : > { %v1584_v45 = vpop.f32.mrb[10].mxu0  ;;  %v2975_v42 = vld [vmem:[#allocation13 + $0x90] sm:$0xff]   ;;  %v2977_v44 = vld [vmem:[#allocation13 + $0xd8] sm:$0xff]  }
 0xd75   : > { %v3836_v46 = vadd.f32 %v1582_v43, %v3691_v0  ;;  %v2766_v18 = vpop.f32.mrb[11].mxu0  ;;  %v2933_v0 = vld [vmem:[#allocation11 + $0x4c] ss:$16 sps:$4 sm:$0xff]  }
 0xd76   : > { %1875 = vmatprep.subr.bf16.mxu0 %v2933_v0  ;;  %v2976_v43 = vld [vmem:[#allocation13 + $0x58] sm:$0xff]   ;;  %v2989_v0 = vld [vmem:[#allocation13 + $0xf0] sm:$0xff]  }
 0xd77   : > { %1590 = vadd.xlane.f32.xlu0 %v3836_v46  ;;  %1876 = vmatpush1.bf16.msra.mxu0 %v2931_v59  ;;  %v2978_v45 = vld [vmem:[#allocation13 + $0x18] sm:$0xff]   ;;  %v2991_v59 = vld [vmem:[#allocation13 + $0xb0] sm:$0xff]  }
 0xd78   : > { %1877 = vmatprep.subr.bf16.mxu0 %v2939_v1  ;;  %v2979_v18 = vld [vmem:[#allocation13 + $0x98] sm:$0xff]   ;;  %v1651_v1 = vshrl.u32 %v1650_v63, 7 }
 0xd7a   : > { %v1652_v2 = vsub.s32 0, %v1651_v1  ;;  %v1664_v7 = vsub.s32 3, %v1651_v1 }
 0xd7b   : > { %1878 = vmatpush1.bf16.msra.mxu0 %v2937_v4  ;;  %v1660_v4 = vsub.s32 2, %v1651_v1 }
 0xd7c   : > { %1879 = vmatprep.subr.bf16.mxu0 %v2945_v6  ;;  %v1656_v6 = vsub.s32 1, %v1651_v1  ;;  %v1665_v11 = vrot.slane %v1648_v5, %v1664_v7 }
 0xd7d   : > { %v1661_v9 = vrot.slane %v1648_v5, %v1660_v4 }
 0xd7f   : > { %1880 = vmatpush1.bf16.msra.mxu0 %v2943_v8  ;;  %v1653_v8 = vrot.slane %v1648_v5, %v1652_v2 }
 0xd80   : > { %1881 = vmatprep.subr.bf16.mxu0 %v2951_v10  ;;  %v1657_v10 = vrot.slane %v1648_v5, %v1656_v6 }
 0xd83   : > { %1882 = vmatpush1.bf16.msra.mxu0 %v2949_v12 }
 0xd84   : > { %1883 = vmatprep.subr.bf16.mxu0 %v2957_v14 }
 0xd87   : > { %1884 = vmatpush1.bf16.msra.mxu0 %v2955_v16 }
 0xd88   : > { %1885 = vmatprep.subr.bf16.mxu0 %v2963_v19 }
 0xd8b   : > { %1886 = vmatpush1.bf16.msra.mxu0 %v2961_v21 }
 0xd8c   : > { %2617 = vmatprep.subr.bf16.mxu0 %v2965_v23 }
 0xe04   : > { %v1591_v48 = vpop.xlane.xlu0 %1590 }
 0xe05   : > { %v1592_v54 = vmul.f32 0.0078125, %v1591_v48  ;;  %v2992_v48 = vld [vmem:[#allocation13 + $0x78] sm:$0xff]  }
 0xe07   : > { %v1593_v61 = vsub.f32 %v3836_v46, %v1592_v54  ;;  %v2993_v54 = vld [vmem:[#allocation13 + $0xf8] sm:$0xff]  }
 0xe09   : > { %v1594_v62 = vmul.f32 %v1593_v61, %v1593_v61 }
 0xe0b   : > { %1595 = vadd.xlane.f32.xlu1 %v1594_v62  ;;  %v2995_v62 = vld [vmem:[#allocation13 + $0xb8] sm:$0xff]  }
 0xe98   : > { %v1596_v24 = vpop.xlane.xlu1 %1595 }
 0xe99   : > { %v1597_v25 = vmul.f32 0.0078125, %v1596_v24 }
 0xe9b   : > { %v1598_v26 = vadd.f32 1e-05, %v1597_v25 }
 0xe9d   : > { %3014 = vrsqrt.f32 %v1598_v26 }
 0xea7   : > { %v3015_v27 = vpop.eup %3014 }
 0xea8   : > { %v1600_v29 = vmul.f32 %v3015_v27, %v1593_v61  ;;  %v2994_v61 = vld [vmem:[#allocation13 + $0x38] sm:$0xff]  }
 0xeaa   : > { %v1607_v31 = vmul.f32 %v2472_v28, %v1600_v29 }
 0xeac   : > { %v1614_v32 = vadd.f32 %v2473_v30, %v1607_v31 }
 0xeae   : > { %v1615_v35 = vpack.c.bf16 %v1614_v32, %v1614_v32 }
 0xeb0   : > { %1863 = vmatmul.mubr.bf16.vlgmr.msra.gmra.mrb[36].mxu1 %v1615_v35  ;;  %1904 = vmatmul.mubr.bf16.vlgmr.msra.gmra.mrb[12].mxu0 %v1615_v35 }
 0xeb1   : > { %2596 = vmatpush3.bf16.msra.mxu1 %v2966_v33  ;;  %2618 = vmatpush3.bf16.msra.mxu0 %v2967_v34  ;;  %v2506_v34 = vld [vmem:[%s3968_s22] ss:$0 sm:$0xff] }
 0xeb2   : > { %2597 = vmatprep.subr.bf16.mxu1 %v2968_v36  ;;  %2619 = vmatprep.subr.bf16.mxu0 %v2969_v37 }
 0xeb5   : > { %2598 = vmatpush3.bf16.msra.mxu1 %v2970_v38  ;;  %2620 = vmatpush3.bf16.msra.mxu0 %v2971_v39 }
 0xeb6   : > { %2599 = vmatprep.subr.bf16.mxu1 %v2972_v40  ;;  %2621 = vmatprep.subr.bf16.mxu0 %v2973_v41 }
 0xeb9   : > { %2600 = vmatpush3.bf16.msra.mxu1 %v2974_v3  ;;  %2622 = vmatpush3.bf16.msra.mxu0 %v2975_v42 }
 0xeba   : > { %2601 = vmatprep.subr.bf16.mxu1 %v2976_v43  ;;  %2623 = vmatprep.subr.bf16.mxu0 %v2977_v44 }
 0xebd   : > { %2602 = vmatpush3.bf16.msra.mxu1 %v2978_v45  ;;  %2624 = vmatpush3.bf16.msra.mxu0 %v2979_v18 }
 0xebe   : > { %2603 = vmatprep.subr.bf16.mxu1 %v2980_v47  ;;  %2625 = vmatprep.subr.bf16.mxu0 %v2981_v49 }
 0xec1   : > { %2604 = vmatpush3.bf16.msra.mxu1 %v2982_v50  ;;  %2626 = vmatpush3.bf16.msra.mxu0 %v2983_v51 }
 0xec2   : > { %2605 = vmatprep.subr.bf16.mxu1 %v2984_v52  ;;  %2627 = vmatprep.subr.bf16.mxu0 %v2985_v53 }
 0xec5   : > { %2606 = vmatpush3.bf16.msra.mxu1 %v2986_v55  ;;  %2628 = vmatpush3.bf16.msra.mxu0 %v2987_v56 }
 0xec6   : > { %2607 = vmatprep.subr.bf16.mxu1 %v2988_v57  ;;  %2629 = vmatprep.subr.bf16.mxu0 %v2989_v0 }
 0xec9   : > { %2608 = vmatpush3.bf16.msra.mxu1 %v2990_v58  ;;  %2630 = vmatpush3.bf16.msra.mxu0 %v2991_v59 }
 0xeca   : > { %2609 = vmatprep.subr.bf16.mxu1 %v2992_v48  ;;  %2631 = vmatprep.subr.bf16.mxu0 %v2993_v54 }
 0xecd   : > { %2610 = vmatpush3.bf16.msra.mxu1 %v2994_v61  ;;  %2632 = vmatpush3.bf16.msra.mxu0 %v2995_v62 }
 0xf83   : > { %v1864_v12 = vpop.f32.mrb[36].mxu1  ;;  %v1905_v13 = vpop.f32.mrb[12].mxu0 }
 0xf84   : > { %v1865_v14 = vadd.f32 %v1864_v12, %v1653_v8  ;;  %v1906_v15 = vadd.f32 %v1905_v13, %v1661_v9  ;;  %v1866_v16 = vpop.f32.mrb[37].mxu1  ;;  %v1907_v17 = vpop.f32.mrb[13].mxu0 }
 0xf85   : > { %v1867_v19 = vadd.f32 %v1866_v16, %v1657_v10  ;;  %v1908_v20 = vadd.f32 %v1907_v17, %v1665_v11  ;;  %v1868_v21 = vpop.f32.mrb[38].mxu1  ;;  %v1909_v60 = vpop.f32.mrb[14].mxu0 }
 0xf86   : > { %v1912_v22 = vmax.f32 %v1865_v14, 0.0  ;;  %v1914_v23 = vmax.f32 %v1906_v15, 0.0  ;;  %v1869_v24 = vpop.f32.mrb[39].mxu1  ;;  %v1910_v25 = vpop.f32.mrb[15].mxu0 }
 0xf87   : > { %v1913_v26 = vmax.f32 %v1867_v19, 0.0  ;;  %v1915_v27 = vmax.f32 %v1908_v20, 0.0 }
 0xf88   : > { %v1916_v30 = vpack.c.bf16 %v1912_v22, %v1912_v22  ;;  %v1918_v31 = vpack.c.bf16 %v1914_v23, %v1914_v23 }
 0xf89   : > { %v1917_v28 = vpack.c.bf16 %v1913_v26, %v1913_v26  ;;  %v1919_v29 = vpack.c.bf16 %v1915_v27, %v1915_v27 }
 0xf8b   : > { %2215 = vmatprep.mubr.bf16.mxu1 %v1917_v28  ;;  %2255 = vmatprep.mubr.bf16.mxu0 %v1919_v29 }
 0xf8c   : > { %2216 = vmatmul.mubr.bf16.vlgmr.msra.gmra.mrb[40].mxu1 %v1916_v30  ;;  %2256 = vmatmul.mubr.bf16.vlgmr.msra.gmra.mrb[16].mxu0 %v1918_v31 }
0x105f   : > { %v2611_v32 = vpop.f32.mrb[40].mxu1  ;;  %v2633_v33 = vpop.f32.mrb[16].mxu0 }
0x1060   : > { %v2612_v35 = vpop.f32.mrb[41].mxu1  ;;  %v2634_v36 = vpop.f32.mrb[17].mxu0 }
0x1061   : > { %v2613_v37 = vadd.f32 %v2612_v35, %v2611_v32  ;;  %v2635_v38 = vadd.f32 %v2634_v36, %v2633_v33  ;;  %v2614_v39 = vpop.f32.mrb[42].mxu1  ;;  %v2636_v40 = vpop.f32.mrb[18].mxu0 }
0x1062   : > { %v2615_v41 = vpop.f32.mrb[43].mxu1  ;;  %v2637_v3 = vpop.f32.mrb[19].mxu0 }
0x1063   : > { %v2218_v42 = vadd.f32 %v2613_v37, %v2506_v34 }
0x1065   : > { %v2258_v43 = vadd.f32 %v2635_v38, %v2218_v42 }
0x1067   : > { %v2263_v44 = vadd.f32 %v2258_v43, %v3836_v46 }
0x1069   : > { %2264 = vst [vmem:[%s650_s20] sm:$0xff] %v2263_v44 }
0x106a   : > { %3227 = shalt.err (!%p3224_p3)
}
0x106b   : > { %s3228_s19 = scalar_lea.hbm %s3859_s30, 128  ;;  %s3232_s14 = scalar_lea.hbm %s3969_s12, 256 }
0x106c   : > { %p3229_p4 = scmp.ne.s32.totalorder %s3859_s30, %s3228_s19  ;;  %p3233_p8 = scmp.lt.u32.totalorder %s3859_s30, %s3969_s12 }
0x106d   : > { %p3234_p5 = scmp.lt.u32.totalorder %s3232_s14, %s3228_s19  ;;  %p3236_p6 = scmp.lt.u32.totalorder %s3228_s19, %s3859_s30 }
0x106e   : > { %p3230_p10 = pnand %p3229_p4, %p3970_p9 }
0x106f   : > { %p3235_p7 = por %p3234_p5, %p3233_p8 }
0x1070   : > { %p3231_p11 = pneg %p3230_p10 }
0x1071   : > { %p3237_p12 = por %p3236_p6, %p3235_p7 }
0x1073   : > { %p3238_p1 = pnand %p3237_p12, %p3231_p11 }
0x1075   : > { %3241 = shalt.err (!%p3238_p1)
}
0x1076   : > { %2793 = dma.vmem_to_hbm [thread:$0]  (%p3970_p9), %s3861_s8, 128, %s3859_s30, %s2266_s17  }
0x1077 PF: > { %s2291_s7 = sand.u32 1, %s3280_s24   ;;  %p3971_p13 = scmp.ne.s32.totalorder %s3952_s29, 0 }
0x1078   : > { %p3972_p0 = scmp.ge.s32.totalorder %s3292_s27, 2  ;;  %s2292_s28 = scalar_lea.sflag [#allocation4], %s2291_s7 }
0x107a   : > { %p2819_p2 = pnand %p3972_p0, %p3971_p13 }
0x107c   : > { %3275 = dma.done.wait (!%p2819_p2), %s2292_s28, 128  }
0x107d   : > { %3277 = vsyncadd (!%p2819_p2), %s2292_s28, 4294967168  ;;  %p33_p3 = scmp.ge.s32.totalorder %s3593_s18, 4   ;;  %s3973_s24 = smov %s3284_s25 }
0x107e   : > { %s3974_s25 = smov %s3288_s26  ;;  %s3975_s26 = smov %s3604_s21 }
0x107f   : > { %s3976_s27 = smov %s3593_s18  ;;  %35 = sbr.rel (!%p33_p3) target bundleno = 20 (0x14), region = 157 }
0x1086   :  { %2297 = vsyncpa [#allocation3], 1 }
0x1087   :  { %2299 = vsyncpa [#allocation3 + $0x1], 1 }
0x1088   :  { %2300 = vsyncpa [#allocation6], 1 }
0x1089   :  { %2301 = vsyncpa [#allocation9], 1 }
0x108a   :  { %2302 = vsyncpa [#allocation12], 1 }
0x108b   :  { %2303 = vsyncpa [#allocation4], 1 }
0x108c   :  { %2305 = vsyncpa [#allocation4 + $0x1], 1 }

</bundles_post_ra>
